<compile_context>
chip_gen: v7x
topology: tpu7x:2x2x1
jax: 0.10.0
libtpu: 0.0.40
codegen_flags: <defaults>
</compile_context>

<pallas_src>
import functools

import jax
import jax.numpy as jnp
from jax.experimental import pallas as pl
from jax.experimental.pallas import tpu as pltpu


# ----------------------------- Pallas kernel ------------------------------- #
def _ms_sep_pred_kernel(x_ref, wpw_ref, bpw_ref, shift_ref, wvec_ref, bdw_ref,
                        out_ref, v_ref, *, sig_w, v_th, k, cout):
    """One grid step = (one batch tile, one SNN time step).  Lane-dense layout.

    x_ref    : (1, bt, H, W*Cin)   bf16 input features, step t, batch tile b
    wpw_ref  : (W*Cin, W*Cout)     bf16 block-diag kron(I_W, W_pw) pointwise weight
    bpw_ref  : (1, W*Cout)         f32 pointwise bias, tiled over W
    shift_ref: (k, bt*H, bt*H)     f32 0/1 row-shift matrices (per-kh tap)
    wvec_ref : (k*k, W*Cout)       f32 per-tap depthwise weights, W-border zeroed
    bdw_ref  : (1, W*Cout)         f32 depthwise bias, tiled over W
    out_ref  : (1, bt, H, W*Cout)  bf16 output, step t, batch tile b
    v_ref    : (bt, H, W*Cin)      f32 membrane potential (persists across t)
    """
    t = pl.program_id(1)

    @pl.when(t == 0)
    def _():
        v_ref[...] = jnp.zeros_like(v_ref)

    x = x_ref[0].astype(jnp.float32)                       # (bt, H, W*Cin)
    bt, hh, wcin = x.shape
    wcout = bpw_ref.shape[-1]
    pad = k // 2

    # ---- PLIF neuron: charge, fire, hard reset (v_reset = 0) ----
    v = v_ref[...]
    v = v + (x - v) * sig_w
    spike = (v >= v_th).astype(jnp.float32)
    v_ref[...] = v * (1.0 - spike)

    # ---- pointwise 1x1 conv: ONE lane-dense MXU matmul (block-diagonal weight)
    # merge (bt, H) into sublanes (layout-preserving, H % 8 == 0); spikes are
    # 0/1 so the bf16 cast is exact.
    s2 = spike.reshape(bt * hh, wcin).astype(jnp.bfloat16)
    y2 = jnp.dot(s2, wpw_ref[...], preferred_element_type=jnp.float32)
    y2 = y2 + bpw_ref[...]                                  # (bt*H, W*Cout)

    # ---- depthwise k x k conv (stride 1, padding k//2, groups = Cout) ----
    # kh taps: 0/1 shift-matrix matmul (MXU, exact, no halo scratch / misaligned
    #          sublane slices; zero rows implement the H zero-padding).
    # kw taps: lane roll by dw*Cout (XLU); the W zero-padding is folded into the
    #          per-lane weight vector wvec (wrapped lanes have weight 0).
    wv = wvec_ref[...]                                      # (k*k, W*Cout)
    acc = None
    for kh in range(k):
        if kh == pad:
            ykh = y2
        else:
            ykh = jnp.dot(shift_ref[kh], y2, preferred_element_type=jnp.float32)
        for kw in range(k):
            dw = kw - pad
            if dw == 0:
                tap = ykh
            else:
                # out[l] = in[(l - shift) mod L]  ->  shift = -dw*Cout gives
                # tap[.., w*C + c] = y[.., (w+dw)*C + c]
                tap = pltpu.roll(ykh, shift=(-dw * cout) % wcout, axis=1)
            i = kh * k + kw
            contrib = tap * wv[i:i + 1, :]
            acc = contrib if acc is None else acc + contrib
    acc = acc + bdw_ref[...]

    out_ref[0] = acc.reshape(bt, hh, wcout).astype(out_ref.dtype)


# ------------------------------- wrapper ------------------------------------ #
def ms_spiking_sep_pred_layer(x_tnchw, w_pw, b_pw, w_dw, b_dw, *,
                              sig_w, v_th, k, batch_tile=None,
                              out_dtype=jnp.bfloat16):
    """x_tnchw: (T, N, Cin, H, W) -> (T, N, Cout, H, W).

    PyTorch Conv2d weight layouts: w_pw (Cout, Cin, 1, 1), w_dw (Cout, 1, k, k).
    Layout plumbing (transposes / kron / tap tables) lives here, not in the kernel.
    """
    T, N, Cin, H, W = x_tnchw.shape
    Cout = w_pw.shape[0]
    pad = k // 2

    if batch_tile is None:
        # v5e/v6e: biggest tile that fits VMEM.  v7x: pass batch_tile <= N//2 so
        # nb >= 2 and the "parallel" axis shards across both TensorCores.
        batch_tile = N
    assert N % batch_tile == 0, "batch must divide into batch tiles"
    nb = N // batch_tile
    assert H % 8 == 0, "H must be a multiple of 8 (sublane-aligned reshapes)"

    WCin, WCout = W * Cin, W * Cout

    # lane-dense input: TNHWC with W folded into the lane dim, bf16 for HBM I/O
    x = jnp.transpose(x_tnchw, (0, 1, 3, 4, 2)).reshape(T, N, H, WCin)
    x = x.astype(jnp.bfloat16)

    # pointwise weight as block-diagonal kron(I_W, W_pw^T): the (bt*H, W*Cin)
    # spike slab hits the MXU directly, no relayout out of the lane-folded layout
    w_pw2 = jnp.transpose(w_pw[:, :, 0, 0], (1, 0)).astype(jnp.float32)   # (Cin, Cout)
    w_pw_bd = jnp.kron(jnp.eye(W, dtype=jnp.float32), w_pw2).astype(jnp.bfloat16)
    b_pw_v = jnp.tile(b_pw.astype(jnp.float32), W).reshape(1, WCout)

    # per-kh row-shift matrices, block-diagonal over the batch tile
    shift_mats = jnp.stack([
        jnp.kron(jnp.eye(batch_tile, dtype=jnp.float32),
                 jnp.eye(H, H, k=kh - pad, dtype=jnp.float32))
        for kh in range(k)])                                              # (k, bt*H, bt*H)

    # per-(kh,kw) lane weight vectors with the W border zeroed
    w_idx = jnp.arange(W)
    taps = []
    for kh in range(k):
        for kw in range(k):
            dw = kw - pad
            valid = ((w_idx + dw >= 0) & (w_idx + dw < W)).astype(jnp.float32)  # (W,)
            cvec = w_dw[:, 0, kh, kw].astype(jnp.float32)                       # (Cout,)
            taps.append((valid[:, None] * cvec[None, :]).reshape(WCout))
    w_dw_v = jnp.stack(taps)                                              # (k*k, W*Cout)
    b_dw_v = jnp.tile(b_dw.astype(jnp.float32), W).reshape(1, WCout)

    kernel = functools.partial(_ms_sep_pred_kernel,
                               sig_w=sig_w, v_th=v_th, k=k, cout=Cout)

    out = pl.pallas_call(
        kernel,
        out_shape=jax.ShapeDtypeStruct((T, N, H, WCout), out_dtype),
        grid_spec=pltpu.PrefetchScalarGridSpec(
            num_scalar_prefetch=0,
            grid=(nb, T),   # batch tiles (parallel) outer, time (arbitrary) LAST
            in_specs=[
                pl.BlockSpec((1, batch_tile, H, WCin), lambda b, t: (t, b, 0, 0)),
                pl.BlockSpec((WCin, WCout), lambda b, t: (0, 0)),
                pl.BlockSpec((1, WCout), lambda b, t: (0, 0)),
                pl.BlockSpec((k, batch_tile * H, batch_tile * H),
                             lambda b, t: (0, 0, 0)),
                pl.BlockSpec((k * k, WCout), lambda b, t: (0, 0)),
                pl.BlockSpec((1, WCout), lambda b, t: (0, 0)),
            ],
            out_specs=pl.BlockSpec((1, batch_tile, H, WCout),
                                   lambda b, t: (t, b, 0, 0)),
            scratch_shapes=[
                pltpu.VMEM((batch_tile, H, WCin), jnp.float32),   # membrane v
            ],
        ),
        compiler_params=pltpu.CompilerParams(
            dimension_semantics=("parallel", "arbitrary"),
            vmem_limit_bytes=48 * 1024 * 1024,   # < v7x's 64 MiB physical VMEM
        ),
    )(x, w_pw_bd, b_pw_v, shift_mats, w_dw_v, b_dw_v)

    # lane-dense (T, N, H, W*Cout) -> PyTorch (T, N, Cout, H, W)
    return jnp.transpose(out.reshape(T, N, H, W, Cout), (0, 1, 4, 2, 3))


# --------------------------- pure-JAX reference ----------------------------- #
def _reference(x_tnchw, w_pw, b_pw, w_dw, b_dw, *, sig_w, v_th, k):
    T, N, Cin, H, W = x_tnchw.shape
    Cout = w_pw.shape[0]
    v = jnp.zeros((N, Cin, H, W), jnp.float32)
    spikes = []
    for t in range(T):
        v = v + (x_tnchw[t] - v) * sig_w
        s = (v >= v_th).astype(jnp.float32)
        v = v * (1.0 - s)
        spikes.append(s)
    s = jnp.stack(spikes).reshape(T * N, Cin, H, W)
    y = jax.lax.conv_general_dilated(
        s, w_pw, (1, 1), "VALID",
        dimension_numbers=("NCHW", "OIHW", "NCHW"))
    y = y + b_pw[None, :, None, None]
    p = k // 2
    z = jax.lax.conv_general_dilated(
        y, w_dw, (1, 1), ((p, p), (p, p)),
        dimension_numbers=("NCHW", "OIHW", "NCHW"),
        feature_group_count=Cout)
    z = z + b_dw[None, :, None, None]
    return z.reshape(T, N, Cout, H, W)


# --------------------------------- main ------------------------------------ #
if __name__ == "__main__":
    # small shapes implied by the module: multistep input (T, N, Cin, H, W)
    T, N, Cin, Cout, H, W, K = 4, 2, 32, 32, 16, 16, 3

    key = jax.random.PRNGKey(0)
    kx, kpw, kbpw, kdw, kbdw = jax.random.split(key, 5)

    x_f32 = jax.random.normal(kx, (T, N, Cin, H, W), dtype=jnp.float32)
    # kernel I/O dtype is bf16; give the reference the same (rounded) values so
    # the threshold (spike) decisions are identical.
    x_bf16 = x_f32.astype(jnp.bfloat16)

    # PyTorch Conv2d weight layouts
    w_pw = 0.2 * jax.random.normal(kpw, (Cout, Cin, 1, 1), dtype=jnp.float32)
    b_pw = 0.1 * jax.random.normal(kbpw, (Cout,), dtype=jnp.float32)
    w_dw = 0.3 * jax.random.normal(kdw, (Cout, 1, K, K), dtype=jnp.float32)
    b_dw = 0.1 * jax.random.normal(kbdw, (Cout,), dtype=jnp.float32)

    # PLIF (init_tau=2.0): w_tau = -log(tau-1) = 0  =>  sigmoid(w_tau) = 0.5
    SIG_W = float(jax.nn.sigmoid(-jnp.log(2.0 - 1.0)))
    V_TH = 1.0

    out = ms_spiking_sep_pred_layer(x_bf16, w_pw, b_pw, w_dw, b_dw,
                                    sig_w=SIG_W, v_th=V_TH, k=K)
    out = jax.block_until_ready(out)

    ref = _reference(x_bf16.astype(jnp.float32), w_pw, b_pw, w_dw, b_dw,
                     sig_w=SIG_W, v_th=V_TH, k=K)
    assert out.shape == (T, N, Cout, H, W)
    max_diff = float(jnp.max(jnp.abs(out.astype(jnp.float32) - ref)))
    # bf16 pointwise weight + bf16 output rounding; everything else (PLIF state,
    # spike thresholds, depthwise accumulation) is exact f32 vs the reference.
    assert max_diff < 6e-2, f"mismatch vs reference: {max_diff}"

    print("KERNEL_OK")
</pallas_src>

<mosaic_0001>
module attributes {stable_mosaic.version = 11 : i64} {
  func.func @_ms_sep_pred_kernel(%arg0: i32, %arg1: i32, %arg2: memref<1x2x16x512xbf16, #tpu.memory_space<vmem>>, %arg3: memref<512x512xbf16, #tpu.memory_space<vmem>>, %arg4: memref<1x512xf32, #tpu.memory_space<vmem>>, %arg5: memref<3x32x32xf32, #tpu.memory_space<vmem>>, %arg6: memref<9x512xf32, #tpu.memory_space<vmem>>, %arg7: memref<1x512xf32, #tpu.memory_space<vmem>>, %arg8: memref<1x2x16x512xbf16, #tpu.memory_space<vmem>>, %arg9: memref<2x16x512xf32, #tpu.memory_space<vmem>>) attributes {dimension_semantics = [#tpu.dimension_semantics<parallel>, #tpu.dimension_semantics<arbitrary>], iteration_bounds = array<i64: 1, 4>, scalar_prefetch = 0 : i64, scratch_operands = 1 : i64, tpu.core_type = #tpu.core_type<tc>, window_params = [{transform_indices = @transform_0, window_bounds = array<i64: 1, 2, 16, 512>}, {pipeline_mode = #tpu.pipeline_mode<synchronous>, transform_indices = @transform_1, window_bounds = array<i64: 512, 512>}, {pipeline_mode = #tpu.pipeline_mode<synchronous>, transform_indices = @transform_2, window_bounds = array<i64: 1, 512>}, {pipeline_mode = #tpu.pipeline_mode<synchronous>, transform_indices = @transform_3, window_bounds = array<i64: 3, 32, 32>}, {pipeline_mode = #tpu.pipeline_mode<synchronous>, transform_indices = @transform_4, window_bounds = array<i64: 9, 512>}, {pipeline_mode = #tpu.pipeline_mode<synchronous>, transform_indices = @transform_5, window_bounds = array<i64: 1, 512>}, {transform_indices = @transform_6, window_bounds = array<i64: 1, 2, 16, 512>}]} {
    %c0_i32 = arith.constant 0 : i32
    %0 = arith.cmpi eq, %arg1, %c0_i32 : i32
    %1 = arith.extui %0 : i1 to i32
    %c0_i32_0 = arith.constant 0 : i32
    %2 = arith.cmpi ne, %1, %c0_i32_0 : i32
    scf.if %2 {
      %cst_36 = arith.constant 0.000000e+00 : f32
      %82 = vector.broadcast %cst_36 : f32 to vector<2x16x512xf32>
      %c0_37 = arith.constant 0 : index
      %c0_38 = arith.constant 0 : index
      %c0_39 = arith.constant 0 : index
      %83 = vector.load %arg9[%c0_37, %c0_38, %c0_39] : memref<2x16x512xf32, #tpu.memory_space<vmem>>, vector<2x16x512xf32>
      tpu.vector_store %arg9[%c0_37, %c0_38, %c0_39], %82 {strides = array<i32>} : memref<2x16x512xf32, #tpu.memory_space<vmem>>, vector<2x16x512xf32>,
    } else {
    }
    %c0 = arith.constant 0 : index
    %c0_1 = arith.constant 0 : index
    %c0_2 = arith.constant 0 : index
    %c0_3 = arith.constant 0 : index
    %3 = vector.load %arg2[%c0, %c0_1, %c0_2, %c0_3] : memref<1x2x16x512xbf16, #tpu.memory_space<vmem>>, vector<1x2x16x512xbf16>
    %4 = vector.shape_cast %3 : vector<1x2x16x512xbf16> to vector<2x16x512xbf16>
    %5 = arith.extf %4 : vector<2x16x512xbf16> to vector<2x16x512xf32>
    %c0_4 = arith.constant 0 : index
    %c0_5 = arith.constant 0 : index
    %c0_6 = arith.constant 0 : index
    %6 = vector.load %arg9[%c0_4, %c0_5, %c0_6] : memref<2x16x512xf32, #tpu.memory_space<vmem>>, vector<2x16x512xf32>
    %7 = arith.subf %5, %6 : vector<2x16x512xf32>
    %cst = arith.constant 5.000000e-01 : f32
    %8 = vector.broadcast %cst : f32 to vector<2x16x512xf32>
    %9 = arith.mulf %7, %8 : vector<2x16x512xf32>
    %10 = arith.addf %6, %9 : vector<2x16x512xf32>
    %cst_7 = arith.constant 1.000000e+00 : f32
    %11 = vector.broadcast %cst_7 : f32 to vector<2x16x512xf32>
    %12 = arith.cmpf oge, %10, %11 : vector<2x16x512xf32>
    %13 = arith.extui %12 : vector<2x16x512xi1> to vector<2x16x512xi32>
    %14 = arith.sitofp %13 : vector<2x16x512xi32> to vector<2x16x512xf32>
    %cst_8 = arith.constant 1.000000e+00 : f32
    %15 = vector.broadcast %cst_8 : f32 to vector<2x16x512xf32>
    %16 = arith.subf %15, %14 : vector<2x16x512xf32>
    %17 = arith.mulf %10, %16 : vector<2x16x512xf32>
    %c0_9 = arith.constant 0 : index
    %c0_10 = arith.constant 0 : index
    %c0_11 = arith.constant 0 : index
    %18 = vector.load %arg9[%c0_9, %c0_10, %c0_11] : memref<2x16x512xf32, #tpu.memory_space<vmem>>, vector<2x16x512xf32>
    tpu.vector_store %arg9[%c0_9, %c0_10, %c0_11], %17 {strides = array<i32>} : memref<2x16x512xf32, #tpu.memory_space<vmem>>, vector<2x16x512xf32>,
    %19 = vector.shape_cast %14 : vector<2x16x512xf32> to vector<32x512xf32>
    %20 = arith.truncf %19 : vector<32x512xf32> to vector<32x512xbf16>
    %c0_12 = arith.constant 0 : index
    %c0_13 = arith.constant 0 : index
    %21 = vector.load %arg3[%c0_12, %c0_13] : memref<512x512xbf16, #tpu.memory_space<vmem>>, vector<512x512xbf16>
    %cst_14 = arith.constant dense<0.000000e+00> : vector<32x512xf32>
    %22 = tpu.matmul %20, %21, %cst_14 {dimension_numbers = #tpu.dot_dimension_numbers<[1], [0], [0], [1], [0, 0, 1, 1], [], []>} : vector<32x512xbf16>, vector<512x512xbf16>, vector<32x512xf32> -> vector<32x512xf32>
    %c0_15 = arith.constant 0 : index
    %c0_16 = arith.constant 0 : index
    %23 = vector.load %arg4[%c0_15, %c0_16] : memref<1x512xf32, #tpu.memory_space<vmem>>, vector<1x512xf32>
    %24 = vector.broadcast %23 : vector<1x512xf32> to vector<32x512xf32>
    %25 = arith.addf %22, %24 : vector<32x512xf32>
    %c0_17 = arith.constant 0 : index
    %c0_18 = arith.constant 0 : index
    %26 = vector.load %arg6[%c0_17, %c0_18] : memref<9x512xf32, #tpu.memory_space<vmem>>, vector<9x512xf32>
    %c0_19 = arith.constant 0 : index
    %c0_20 = arith.constant 0 : index
    %c0_21 = arith.constant 0 : index
    %27 = vector.load %arg5[%c0_19, %c0_20, %c0_21] : memref<3x32x32xf32, #tpu.memory_space<vmem>>, vector<1x32x32xf32>
    %28 = vector.shape_cast %27 : vector<1x32x32xf32> to vector<32x32xf32>
    %cst_22 = arith.constant dense<0.000000e+00> : vector<32x512xf32>
    %29 = tpu.matmul %28, %25, %cst_22 {dimension_numbers = #tpu.dot_dimension_numbers<[1], [0], [0], [1], [0, 0, 1, 1], [], []>} : vector<32x32xf32>, vector<32x512xf32>, vector<32x512xf32> -> vector<32x512xf32>
    %c32_i32 = arith.constant 32 : i32
    %30 = tpu.dynamic_rotate %29 by %c32_i32 dim 1 : vector<32x512xf32>, i32 -> vector<32x512xf32>
    %31 = vector.extract_strided_slice %26 {offsets = [0, 0], sizes = [1, 512], strides = [1, 1]} : vector<9x512xf32> to vector<1x512xf32>
    %32 = vector.broadcast %31 : vector<1x512xf32> to vector<32x512xf32>
    %33 = arith.mulf %30, %32 : vector<32x512xf32>
    %34 = vector.extract_strided_slice %26 {offsets = [1, 0], sizes = [1, 512], strides = [1, 1]} : vector<9x512xf32> to vector<1x512xf32>
    %35 = vector.broadcast %34 : vector<1x512xf32> to vector<32x512xf32>
    %36 = arith.mulf %29, %35 : vector<32x512xf32>
    %37 = arith.addf %33, %36 : vector<32x512xf32>
    %c480_i32 = arith.constant 480 : i32
    %38 = tpu.dynamic_rotate %29 by %c480_i32 dim 1 : vector<32x512xf32>, i32 -> vector<32x512xf32>
    %39 = vector.extract_strided_slice %26 {offsets = [2, 0], sizes = [1, 512], strides = [1, 1]} : vector<9x512xf32> to vector<1x512xf32>
    %40 = vector.broadcast %39 : vector<1x512xf32> to vector<32x512xf32>
    %41 = arith.mulf %38, %40 : vector<32x512xf32>
    %42 = arith.addf %37, %41 : vector<32x512xf32>
    %c32_i32_23 = arith.constant 32 : i32
    %43 = tpu.dynamic_rotate %25 by %c32_i32_23 dim 1 : vector<32x512xf32>, i32 -> vector<32x512xf32>
    %44 = vector.extract_strided_slice %26 {offsets = [3, 0], sizes = [1, 512], strides = [1, 1]} : vector<9x512xf32> to vector<1x512xf32>
    %45 = vector.broadcast %44 : vector<1x512xf32> to vector<32x512xf32>
    %46 = arith.mulf %43, %45 : vector<32x512xf32>
    %47 = arith.addf %42, %46 : vector<32x512xf32>
    %48 = vector.extract_strided_slice %26 {offsets = [4, 0], sizes = [1, 512], strides = [1, 1]} : vector<9x512xf32> to vector<1x512xf32>
    %49 = vector.broadcast %48 : vector<1x512xf32> to vector<32x512xf32>
    %50 = arith.mulf %25, %49 : vector<32x512xf32>
    %51 = arith.addf %47, %50 : vector<32x512xf32>
    %c480_i32_24 = arith.constant 480 : i32
    %52 = tpu.dynamic_rotate %25 by %c480_i32_24 dim 1 : vector<32x512xf32>, i32 -> vector<32x512xf32>
    %53 = vector.extract_strided_slice %26 {offsets = [5, 0], sizes = [1, 512], strides = [1, 1]} : vector<9x512xf32> to vector<1x512xf32>
    %54 = vector.broadcast %53 : vector<1x512xf32> to vector<32x512xf32>
    %55 = arith.mulf %52, %54 : vector<32x512xf32>
    %56 = arith.addf %51, %55 : vector<32x512xf32>
    %c2 = arith.constant 2 : index
    %c0_25 = arith.constant 0 : index
    %c0_26 = arith.constant 0 : index
    %57 = vector.load %arg5[%c2, %c0_25, %c0_26] : memref<3x32x32xf32, #tpu.memory_space<vmem>>, vector<1x32x32xf32>
    %58 = vector.shape_cast %57 : vector<1x32x32xf32> to vector<32x32xf32>
    %cst_27 = arith.constant dense<0.000000e+00> : vector<32x512xf32>
    %59 = tpu.matmul %58, %25, %cst_27 {dimension_numbers = #tpu.dot_dimension_numbers<[1], [0], [0], [1], [0, 0, 1, 1], [], []>} : vector<32x32xf32>, vector<32x512xf32>, vector<32x512xf32> -> vector<32x512xf32>
    %c32_i32_28 = arith.constant 32 : i32
    %60 = tpu.dynamic_rotate %59 by %c32_i32_28 dim 1 : vector<32x512xf32>, i32 -> vector<32x512xf32>
    %61 = vector.extract_strided_slice %26 {offsets = [6, 0], sizes = [1, 512], strides = [1, 1]} : vector<9x512xf32> to vector<1x512xf32>
    %62 = vector.broadcast %61 : vector<1x512xf32> to vector<32x512xf32>
    %63 = arith.mulf %60, %62 : vector<32x512xf32>
    %64 = arith.addf %56, %63 : vector<32x512xf32>
    %65 = vector.extract_strided_slice %26 {offsets = [7, 0], sizes = [1, 512], strides = [1, 1]} : vector<9x512xf32> to vector<1x512xf32>
    %66 = vector.broadcast %65 : vector<1x512xf32> to vector<32x512xf32>
    %67 = arith.mulf %59, %66 : vector<32x512xf32>
    %68 = arith.addf %64, %67 : vector<32x512xf32>
    %c480_i32_29 = arith.constant 480 : i32
    %69 = tpu.dynamic_rotate %59 by %c480_i32_29 dim 1 : vector<32x512xf32>, i32 -> vector<32x512xf32>
    %70 = vector.extract_strided_slice %26 {offsets = [8, 0], sizes = [1, 512], strides = [1, 1]} : vector<9x512xf32> to vector<1x512xf32>
    %71 = vector.broadcast %70 : vector<1x512xf32> to vector<32x512xf32>
    %72 = arith.mulf %69, %71 : vector<32x512xf32>
    %73 = arith.addf %68, %72 : vector<32x512xf32>
    %c0_30 = arith.constant 0 : index
    %c0_31 = arith.constant 0 : index
    %74 = vector.load %arg7[%c0_30, %c0_31] : memref<1x512xf32, #tpu.memory_space<vmem>>, vector<1x512xf32>
    %75 = vector.broadcast %74 : vector<1x512xf32> to vector<32x512xf32>
    %76 = arith.addf %73, %75 : vector<32x512xf32>
    %77 = vector.shape_cast %76 : vector<32x512xf32> to vector<2x16x512xf32>
    %78 = arith.truncf %77 : vector<2x16x512xf32> to vector<2x16x512xbf16>
    %c0_32 = arith.constant 0 : index
    %c0_33 = arith.constant 0 : index
    %c0_34 = arith.constant 0 : index
    %c0_35 = arith.constant 0 : index
    %79 = vector.load %arg8[%c0_32, %c0_33, %c0_34, %c0_35] : memref<1x2x16x512xbf16, #tpu.memory_space<vmem>>, vector<1x2x16x512xbf16>
    %80 = vector.shape_cast %79 : vector<1x2x16x512xbf16> to vector<2x16x512xbf16>
    %81 = vector.shape_cast %78 : vector<2x16x512xbf16> to vector<1x2x16x512xbf16>
    tpu.vector_store %arg8[%c0_32, %c0_33, %c0_34, %c0_35], %81 {strides = array<i32>} : memref<1x2x16x512xbf16, #tpu.memory_space<vmem>>, vector<1x2x16x512xbf16>,
    return
  }
  func.func @transform_0(%arg0: i32, %arg1: i32) -> (i32, i32, i32, i32) {
    %c0_i32 = arith.constant 0 : i32
    %c0_i32_0 = arith.constant 0 : i32
    %c0_i32_1 = arith.constant 0 : i32
    return %arg1, %arg0, %c0_i32, %c0_i32_0 : i32, i32, i32, i32
  }
  func.func @transform_1(%arg0: i32, %arg1: i32) -> (i32, i32) {
    %c0_i32 = arith.constant 0 : i32
    %c0_i32_0 = arith.constant 0 : i32
    %c0_i32_1 = arith.constant 0 : i32
    return %c0_i32, %c0_i32_0 : i32, i32
  }
  func.func @transform_2(%arg0: i32, %arg1: i32) -> (i32, i32) {
    %c0_i32 = arith.constant 0 : i32
    %c0_i32_0 = arith.constant 0 : i32
    %c0_i32_1 = arith.constant 0 : i32
    return %c0_i32, %c0_i32_0 : i32, i32
  }
  func.func @transform_3(%arg0: i32, %arg1: i32) -> (i32, i32, i32) {
    %c0_i32 = arith.constant 0 : i32
    %c0_i32_0 = arith.constant 0 : i32
    %c0_i32_1 = arith.constant 0 : i32
    %c0_i32_2 = arith.constant 0 : i32
    return %c0_i32, %c0_i32_0, %c0_i32_1 : i32, i32, i32
  }
  func.func @transform_4(%arg0: i32, %arg1: i32) -> (i32, i32) {
    %c0_i32 = arith.constant 0 : i32
    %c0_i32_0 = arith.constant 0 : i32
    %c0_i32_1 = arith.constant 0 : i32
    return %c0_i32, %c0_i32_0 : i32, i32
  }
  func.func @transform_5(%arg0: i32, %arg1: i32) -> (i32, i32) {
    %c0_i32 = arith.constant 0 : i32
    %c0_i32_0 = arith.constant 0 : i32
    %c0_i32_1 = arith.constant 0 : i32
    return %c0_i32, %c0_i32_0 : i32, i32
  }
  func.func @transform_6(%arg0: i32, %arg1: i32) -> (i32, i32, i32, i32) {
    %c0_i32 = arith.constant 0 : i32
    %c0_i32_0 = arith.constant 0 : i32
    %c0_i32_1 = arith.constant 0 : i32
    return %arg1, %arg0, %c0_i32, %c0_i32_0 : i32, i32, i32, i32
  }
}

</mosaic_0001>

<bundles_post_ra>
// kernel: tpu_custom_call.1
= control target key start
LH: loop header
LB: loop body
LE: loop exit
PB: predicated region body
PF: predicated region fallthrough
CT: control target
= control target key end

     0   :  { %s5348_s0 = inlined_call_operand.hbm [shape: bf16[4,2,16,512], index: 0, kind: input, shape index: {}]   ;;  %s5349_s1 = inlined_call_operand.hbm [shape: bf16[512,512], index: 1, kind: input, shape index: {}]   ;;  %s5350_s2 = inlined_call_operand.vmem [shape: f32[1,512], index: 2, kind: input, shape index: {}]   ;;  %s5351_s3 = inlined_call_operand.hbm [shape: f32[3,32,32], index: 3, kind: input, shape index: {}]   ;;  %s5352_s4 = inlined_call_operand.hbm [shape: f32[9,512], index: 4, kind: input, shape index: {}]   ;;  %s5353_s5 = inlined_call_operand.vmem [shape: f32[1,512], index: 5, kind: input, shape index: {}]   ;;  %s5354_s6 = inlined_call_operand.hbm [shape: bf16[4,2,16,512], index: 6, kind: output, shape index: {}]  }
   0x1   :  { %5429 = sst [smem:[#allocation93_spill]] %s5349_s1 }
   0x2   :  { %11 = vsyncpa [#allocation4], 0 }
   0x3   :  { %13 = vsyncpa [#allocation4 + $0x1], 0 }
   0x4   :  { %14 = vsyncpa [#allocation7], 0 }
   0x5   :  { %15 = vsyncpa [#allocation10], 0 }
   0x6   :  { %16 = vsyncpa [#allocation5], 0 }
   0x7   :  { %18 = vsyncpa [#allocation5 + $0x1], 0  ;;  %s3739_s21 = smov 0   ;;  %s3741_s22 = smov 0  }
   0x8   :  { %s3743_s23 = smov 0   ;;  %s3745_s24 = smov 0  }
   0x9   :  { %s3747_s25 = smov 0   ;;  %s3749_s26 = smov 0  }
   0xa LB: > { %5430 = sst [smem:[#allocation16_spill]] %s3664_s21  ;;  %s2882_s27 = sadd.s32 4294967295, %s3684_s26   ;;  %s3684_s26 = sphi %s3749_s26, %s24_s26   ;;  %s3680_s25 = sphi %s3747_s25, %s5616_s25   ;;  %s3676_s24 = sphi %s3745_s24, %s5615_s24   ;;  %s3672_s23 = sphi %s3743_s23, %s5614_s23   ;;  %s3668_s22 = sphi %s3741_s22, %s5613_s22   ;;  %s3664_s21 = sphi %s3739_s21, %s5612_s21  }
   0xb   : > { %s2883_s28 = sadd.s32 4294967294, %s3684_s26   ;;  %p58_p0 = scmp.ne.s32.totalorder %s3668_s22, %s3664_s21 }
   0xc   : > { %p3773_p1 = scmp.eq.s32.totalorder %s2882_s27, 0  ;;  %p3777_p2 = scmp.eq.s32.totalorder %s2882_s27, 3 }
   0xd   : > { %p195_p3 = scmp.eq.s32.totalorder %s2883_s28, 3  ;;  %p2884_p5 = scmp.ge.s32.totalorder %s3684_s26, 1 }
   0xe   : > { %s5431_s29 = scalar_select %p3773_p1, 1, 0 }
   0xf   : > { %s5432_s30 = scalar_select %p3777_p2, 1, 0 }
  0x10   : > { %p3783_p4 = por %p3773_p1, %p58_p0  ;;  %p3788_p6 = por %p195_p3, %p58_p0 }
  0x11   : > { %p202_p7 = scmp.lt.s32.totalorder %s3684_s26, 5  ;;  %s3686_s10 = smov [#allocation6]  }
  0x12   : > { %s5433_s7 = scalar_select %p3783_p4, 1, 0 }
  0x13   : > { %s5434_s8 = scalar_select %p3788_p6, 1, 0 }
  0x14   : > { %p3793_p8 = pnand %p2884_p5, %p202_p7  ;;  %s214_s11 = sshll.u32 %s3686_s10, 4  ;;  %s215_s11 = int_to_ptr.vmem [resolvable:$true] %s214_s11 }
  0x15   : > { %5435 = sst [smem:[#allocation17_spill]] %s5434_s8  ;;  %s3687_s13 = smov [#allocation8]  }
  0x16   : > { %s5436_s9 = scalar_select %p3793_p8, 1, 0 }
  0x17   : > { %p3198_p9 = pneg %p3793_p8  ;;  %s230_s14 = sshll.u32 %s3687_s13, 4  ;;  %s3805_s14 = int_to_ptr.vmem [resolvable:$true] %s230_s14 }
  0x18   : > { %s5438_s1 = sld [smem:[#allocation93_spill]] }
  0x19   : > { %p3801_p10 = pnand %p3198_p9, %p3773_p1 }
  0x1b   : > { %p3815_p12 = pneg %p3801_p10 }
  0x1e   : > { %s3480_s17 = scalar_lea.hbm %s5438_s1, 16384 }
  0x1f   : > { %p3481_p11 = scmp.ne.s32.totalorder %s5438_s1, %s3480_s17  ;;  %p3487_p3 = scmp.lt.u32.totalorder %s3480_s17, %s5438_s1 }
  0x21   : > { %p3483_p13 = pnand %p3815_p12, %p3481_p11 }
  0x23   : > { %p3484_p0 = pneg %p3483_p13 }
  0x25   : > { %p3489_p5 = pnand %p3487_p3, %p3484_p0 }
  0x27   : > { %3492 = shalt.err (!%p3489_p5)
}
  0x28   : > { %s3493_s10 = scalar_lea.vmem %s215_s11, 16384  ;;  %p3501_p1 = scmp.lt.s32.totalorder %s215_s11, %s215_s11 }
  0x29   : > { %p3494_p7 = scmp.ne.s32.totalorder %s215_s11, %s3493_s10  ;;  %p3502_p4 = scmp.lt.s32.totalorder %s3493_s10, %s3493_s10 }
  0x2b   : > { %p3496_p9 = pnand %p3494_p7, %p3815_p12  ;;  %p3503_p8 = por %p3502_p4, %p3501_p1 }
  0x2d   : > { %p3497_p6 = pneg %p3496_p9 }
  0x2f   : > { %p3504_p2 = pnand %p3503_p8, %p3497_p6 }
  0x31   : > { %3507 = shalt.err (!%p3504_p2)
}
  0x32   : > { %s5361_s13 = smov 256   ;;  %s5362_s15 = smov 16  }
  0x33   : > { %3201 = dma.hbm_to_vmem [thread:$0]  (!%p3801_p10), %s5438_s1, 16384, %s215_s11, [#allocation7], %s5361_s13, %s5361_s13, %s5362_s15  }
  0x34   : > { %s3508_s27 = scalar_lea.hbm %s5351_s3, 1536 }
  0x35   : > { %p3509_p1 = scmp.ne.s32.totalorder %s5351_s3, %s3508_s27  ;;  %p3515_p6 = scmp.lt.u32.totalorder %s3508_s27, %s5351_s3 }
  0x37   : > { %p3511_p2 = pnand %p3509_p1, %p3815_p12 }
  0x39   : > { %p3512_p4 = pneg %p3511_p2 }
  0x3b   : > { %p3517_p8 = pnand %p3515_p6, %p3512_p4 }
  0x3d   : > { %3520 = shalt.err (!%p3517_p8)
}
  0x3e   : > { %s3521_s11 = scalar_lea.vmem %s3805_s14, 1536  ;;  %p3529_p3 = scmp.lt.s32.totalorder %s3805_s14, %s3805_s14 }
  0x3f   : > { %p3522_p11 = scmp.ne.s32.totalorder %s3805_s14, %s3521_s11  ;;  %p3530_p5 = scmp.lt.s32.totalorder %s3521_s11, %s3521_s11 }
  0x41   : > { %p3524_p13 = pnand %p3522_p11, %p3815_p12  ;;  %p3531_p7 = por %p3530_p5, %p3529_p3 }
  0x43   : > { %p3525_p0 = pneg %p3524_p13 }
  0x45   : > { %p3532_p9 = pnand %p3531_p7, %p3525_p0 }
  0x47   : > { %3535 = shalt.err (!%p3532_p9)
}
  0x48   : > { %s3690_s16 = smov 128   ;;  %s3691_s21 = smov 8  }
  0x49   : > { %3204 = dma.hbm_to_vmem [thread:$0]  (!%p3801_p10), %s5351_s3, 1536, %s3805_s14, [#allocation7], %s3690_s16, %s3690_s16, %s3691_s21  }
  0x4a   : > { %s3692_s18 = smov [#allocation9]   ;;  %s3536_s10 = scalar_lea.hbm %s5352_s4, 1024 }
  0x4b   : > { %s243_s19 = sshll.u32 %s3692_s18, 4  ;;  %p3537_p1 = scmp.ne.s32.totalorder %s5352_s4, %s3536_s10  ;;  %s244_s19 = int_to_ptr.vmem [resolvable:$true] %s243_s19 }
  0x4c   : > { %p3543_p6 = scmp.lt.u32.totalorder %s3536_s10, %s5352_s4 }
  0x4d   : > { %p3539_p2 = pnand %p3537_p1, %p3815_p12 }
  0x4f   : > { %p3540_p4 = pneg %p3539_p2 }
  0x51   : > { %p3545_p8 = pnand %p3543_p6, %p3540_p4 }
  0x53   : > { %3548 = shalt.err (!%p3545_p8)
}
  0x54   : > { %s3549_s14 = scalar_lea.vmem %s244_s19, 1024  ;;  %p3557_p3 = scmp.lt.s32.totalorder %s244_s19, %s244_s19 }
  0x55   : > { %p3550_p11 = scmp.ne.s32.totalorder %s244_s19, %s3549_s14  ;;  %p3558_p5 = scmp.lt.s32.totalorder %s3549_s14, %s3549_s14 }
  0x57   : > { %p3552_p13 = pnand %p3550_p11, %p3815_p12  ;;  %p3559_p7 = por %p3558_p5, %p3557_p3 }
  0x59   : > { %p3553_p0 = pneg %p3552_p13 }
  0x5b   : > { %p3560_p9 = pnand %p3559_p7, %p3553_p0 }
  0x5d   : > { %3563 = shalt.err (!%p3560_p9)
}
  0x5e   : > { %s3693_s13 = smov 512   ;;  %s3694_s1 = smov 32  }
  0x5f   : > { %3207 = dma.hbm_to_vmem [thread:$0]  (!%p3801_p10), %s5352_s4, 1024, %s244_s19, [#allocation10], %s3693_s13, %s3693_s13, %s3694_s1  }
  0x60   : > { %s45_s16 = sadd.s32 1, %s3672_s23  ;;  %s33_s21 = sadd.s32 1, %s3680_s25 }
  0x61   : > { %p52_p12 = scmp.ne.s32.totalorder %s3672_s23, %s3668_s22  ;;  %p34_p1 = scmp.ge.s32.totalorder %s33_s21, 4 }
  0x62   : > { %p53_p2 = scmp.eq.s32.totalorder %s3684_s26, 0  ;;  %p5440_p4 = scmp.ne.s32.totalorder %s5432_s30, 0 }
  0x63   : > { %p3219_p8 = scmp.lt.s32.totalorder %s3684_s26, 4  ;;  %s5618_s21 = smov (%p34_p1, %s33_s21), 0 }
  0x64   : > { %p3882_p6 = por %p5440_p4, %p52_p12  ;;  %p54_p11 = por %p53_p2, %p52_p12 }
  0x65   : > { %s260_s12 = sand.u32 1, %s3672_s23   ;;  %s40_s17 = ssub.s32 %s3680_s25, %s5618_s21 }
  0x66   : > { %p43_p13 = scmp.eq.s32.totalorder %s40_s17, 0  ;;  %s2889_s18 = sshll.u32 %s260_s12, 6 }
  0x67   : > { %s3108_s19 = sshll.u32 %s3680_s25, 10  ;;  %s264_s11 = scalar_lea.vmem [#allocation3], %s2889_s18 }
  0x68   : > { %s3894_s27 = scalar_select %p43_p13, %s3672_s23, %s45_s16  }
  0x69   : > { %s3899_s30 = scalar_lea.hbm %s5348_s0, %s3108_s19  ;;  %s274_s14 = sshll.u32 %s264_s11, 4  ;;  %s3901_s14 = int_to_ptr.vmem [resolvable:$true] %s274_s14 }
  0x6a   : > { %p3905_p10 = pnand %p3219_p8, %p54_p11  ;;  %s3909_s1 = scalar_lea.sflag [#allocation4], %s260_s12 }
  0x6b   : > { %s3564_s20 = scalar_lea.hbm %s3899_s30, 1024  ;;  %s3569_s17 = scalar_lea.hbm %s5348_s0, 4096 }
  0x6c   : > { %p3565_p0 = scmp.ne.s32.totalorder %s3899_s30, %s3564_s20  ;;  %p3566_p3 = pneg %p3905_p10 }
  0x6d   : > { %p3570_p9 = scmp.lt.u32.totalorder %s3899_s30, %s5348_s0  ;;  %p3571_p12 = scmp.lt.u32.totalorder %s3569_s17, %s3564_s20 }
  0x6e   : > { %p3567_p5 = pnand %p3566_p3, %p3565_p0  ;;  %p3573_p2 = scmp.lt.u32.totalorder %s3564_s20, %s3899_s30 }
  0x6f   : > { %p3572_p1 = por %p3571_p12, %p3570_p9 }
  0x70   : > { %p3568_p7 = pneg %p3567_p5 }
  0x71   : > { %p3574_p4 = por %p3573_p2, %p3572_p1 }
  0x73   : > { %p3575_p8 = pnand %p3574_p4, %p3568_p7 }
  0x75   : > { %3578 = shalt.err (!%p3575_p8)
}
  0x76   : > { %s3579_s12 = scalar_lea.vmem %s3901_s14, 1024  ;;  %s3695_s28 = smov [#allocation3]  }
  0x77   : > { %p3580_p11 = scmp.ne.s32.totalorder %s3901_s14, %s3579_s12  ;;  %s3584_s10 = sshll.u32 %s3695_s28, 4  ;;  %s3585_s10 = int_to_ptr.vmem [resolvable:$false] %s3584_s10 }
  0x78   : > { %s3586_s11 = scalar_lea.vmem %s3585_s10, 2048  ;;  %p3587_p5 = scmp.lt.s32.totalorder %s3901_s14, %s3585_s10 }
  0x79   : > { %p3582_p13 = pnand %p3580_p11, %p3566_p3  ;;  %p3588_p9 = scmp.lt.s32.totalorder %s3586_s11, %s3579_s12 }
  0x7b   : > { %p3583_p0 = pneg %p3582_p13  ;;  %p3589_p12 = por %p3588_p9, %p3587_p5 }
  0x7d   : > { %p3590_p1 = pnand %p3589_p12, %p3583_p0 }
  0x7f   : > { %3593 = shalt.err (!%p3590_p1)
}
  0x80   : > { %s5443_s20 = smov 16   ;;  %s5444_s15 = smov 256  }
  0x81   : > { %3211 = dma.hbm_to_vmem [thread:$0]  (!%p3905_p10), %s3899_s30, 1024, %s3901_s14, %s3909_s1, %s5444_s15, %s5444_s15, %s5443_s20  }
  0x82   : > { %p5445_p3 = scmp.ne.s32.totalorder %s5436_s9, 0 }
  0x84   : > { %286 = sbr.rel (%p5445_p3) target bundleno = 999 (0x3e7), region = 44 }
  0x8b   : > { %s3943_s16 = sand.u32 1, %s3668_s22   ;;  %p5446_p7 = scmp.ne.s32.totalorder %s5433_s7, 0 }
  0x8c   : > { %s2893_s17 = sshll.u32 %s3943_s16, 6  ;;  %s289_s18 = scalar_lea.sflag [#allocation4], %s3943_s16 }
  0x8d   : > { %s3947_s19 = scalar_lea.vmem [#allocation3], %s2893_s17 }
  0x8e   : > { %3647 = dma.done.wait (%p5446_p7), %s289_s18, 1024  }
  0x8f   : > { %3649 = vsyncadd (%p5446_p7), %s289_s18, 4294966272  ;;  %p5447_p10 = scmp.ne.s32.totalorder %s5431_s29, 0 }
  0x91   : > { %3651 = dma.done.wait (%p5447_p10), [#allocation7], 17920  }
  0x92   : > { %3653 = vsyncadd (%p5447_p10), [#allocation7], 4294949376 }
  0x93   : > { %3655 = dma.done.wait (%p5447_p10), [#allocation10], 1024  }
  0x94   : > { %3657 = vsyncadd (%p5447_p10), [#allocation10], 4294966272  ;;  %s3961_s9 = scalar_lea.vmem [#allocation11], %s2893_s17  ;;  %p2898_p2 = scmp.ne.s32.totalorder %s3676_s24, 0 }
  0x95   : > { %v3696_v0 = vmov (!%p2898_p2), 0.0  }
  0x96   : > { %338 = sbr.rel (%p2898_p2) target bundleno = 158 (0x9e), region = 64  ;;  %339 = vst [vmem:[#allocation2] sm:$0xff] (!%p2898_p2), %v3696_v0  ;;  %340 = vst [vmem:[#allocation2 + $0x8] sm:$0xff] (!%p2898_p2), %v3696_v0 }
  0x97   : > { %341 = vst [vmem:[#allocation2 + $0x10] sm:$0xff] (!%p2898_p2), %v3696_v0  ;;  %342 = vst [vmem:[#allocation2 + $0x18] sm:$0xff] (!%p2898_p2), %v3696_v0 }
  0x98   : > { %343 = vst [vmem:[#allocation2 + $0x20] sm:$0xff] (!%p2898_p2), %v3696_v0  ;;  %344 = vst [vmem:[#allocation2 + $0x28] sm:$0xff] (!%p2898_p2), %v3696_v0 }
  0x99   : > { %345 = vst [vmem:[#allocation2 + $0x30] sm:$0xff] (!%p2898_p2), %v3696_v0  ;;  %346 = vst [vmem:[#allocation2 + $0x38] sm:$0xff] (!%p2898_p2), %v3696_v0 }
  0x9a   : > { %347 = vst [vmem:[#allocation2 + $0x40] sm:$0xff] (!%p2898_p2), %v3696_v0  ;;  %348 = vst [vmem:[#allocation2 + $0x48] sm:$0xff] (!%p2898_p2), %v3696_v0 }
  0x9b   : > { %349 = vst [vmem:[#allocation2 + $0x50] sm:$0xff] (!%p2898_p2), %v3696_v0  ;;  %350 = vst [vmem:[#allocation2 + $0x58] sm:$0xff] (!%p2898_p2), %v3696_v0 }
  0x9c   : > { %351 = vst [vmem:[#allocation2 + $0x60] sm:$0xff] (!%p2898_p2), %v3696_v0  ;;  %352 = vst [vmem:[#allocation2 + $0x68] sm:$0xff] (!%p2898_p2), %v3696_v0 }
  0x9d   : > { %353 = vst [vmem:[#allocation2 + $0x70] sm:$0xff] %v3696_v0  ;;  %354 = vst [vmem:[#allocation2 + $0x78] sm:$0xff] %v3696_v0 }
  0x9e PF: > { %v3288_v1 = vld [vmem:[#allocation6 + $0x4] ss:$16 sps:$4 sm:$0xff]   ;;  %v3290_v2 = vld [vmem:[#allocation6 + $0xc] ss:$16 sps:$4 sm:$0xff]   ;;  %v3292_v3 = vld [vmem:[#allocation6] ss:$16 sps:$4 sm:$0xff]  }
  0x9f   : > { %1337 = vmatprep.subr.bf16.mxu0 %v3288_v1  ;;  %v3293_v4 = vld [vmem:[#allocation6 + $0x8] ss:$16 sps:$4 sm:$0xff]   ;;  %1443 = vmatprep.subr.bf16.mxu1 %v3290_v2  ;;  %v3294_v5 = vld [vmem:[#allocation6 + $0x24] ss:$16 sps:$4 sm:$0xff]   ;;  %v3296_v6 = vld [vmem:[#allocation6 + $0x2c] ss:$16 sps:$4 sm:$0xff]  }
  0xa0   : > { %1338 = vmatpush1.bf16.msra.mxu0 %v3292_v3  ;;  %1444 = vmatpush1.bf16.msra.mxu1 %v3293_v4  ;;  %v3298_v7 = vld [vmem:[#allocation6 + $0x20] ss:$16 sps:$4 sm:$0xff]   ;;  %v3299_v8 = vld [vmem:[#allocation6 + $0x28] ss:$16 sps:$4 sm:$0xff]   ;;  %v3300_v9 = vld [vmem:[#allocation6 + $0x44] ss:$16 sps:$4 sm:$0xff]  }
  0xa1   : > { %1339 = vmatprep.subr.bf16.mxu0 %v3294_v5  ;;  %1445 = vmatprep.subr.bf16.mxu1 %v3296_v6  ;;  %v3302_v10 = vld [vmem:[#allocation6 + $0x4c] ss:$16 sps:$4 sm:$0xff]   ;;  %v3304_v11 = vld [vmem:[#allocation6 + $0x40] ss:$16 sps:$4 sm:$0xff]   ;;  %v3305_v12 = vld [vmem:[#allocation6 + $0x48] ss:$16 sps:$4 sm:$0xff]  }
  0xa2   : > { %v3306_v13 = vld [vmem:[#allocation6 + $0x64] ss:$16 sps:$4 sm:$0xff]   ;;  %v3308_v14 = vld [vmem:[#allocation6 + $0x6c] ss:$16 sps:$4 sm:$0xff]   ;;  %v3310_v15 = vld [vmem:[#allocation6 + $0x60] ss:$16 sps:$4 sm:$0xff]  }
  0xa3   : > { %v3311_v16 = vld [vmem:[#allocation6 + $0x68] ss:$16 sps:$4 sm:$0xff]   ;;  %v3312_v17 = vld [vmem:[#allocation6 + $0x84] ss:$16 sps:$4 sm:$0xff]   ;;  %v3314_v18 = vld [vmem:[#allocation6 + $0x8c] ss:$16 sps:$4 sm:$0xff]  }
  0xa4   : > { %1340 = vmatpush1.bf16.msra.mxu0 %v3298_v7  ;;  %1446 = vmatpush1.bf16.msra.mxu1 %v3299_v8  ;;  %v3316_v19 = vld [vmem:[#allocation6 + $0x80] ss:$16 sps:$4 sm:$0xff]   ;;  %v3317_v20 = vld [vmem:[#allocation6 + $0x88] ss:$16 sps:$4 sm:$0xff]   ;;  %v3318_v21 = vld [vmem:[#allocation6 + $0xa4] ss:$16 sps:$4 sm:$0xff]  }
  0xa5   : > { %1341 = vmatprep.subr.bf16.mxu0 %v3300_v9  ;;  %1447 = vmatprep.subr.bf16.mxu1 %v3302_v10  ;;  %v3320_v22 = vld [vmem:[#allocation6 + $0xac] ss:$16 sps:$4 sm:$0xff]   ;;  %v3322_v23 = vld [vmem:[#allocation6 + $0xa0] ss:$16 sps:$4 sm:$0xff]   ;;  %v3323_v24 = vld [vmem:[#allocation6 + $0xa8] ss:$16 sps:$4 sm:$0xff]  }
  0xa6   : > { %v3324_v25 = vld [vmem:[#allocation6 + $0xc4] ss:$16 sps:$4 sm:$0xff]   ;;  %v3326_v26 = vld [vmem:[#allocation6 + $0xcc] ss:$16 sps:$4 sm:$0xff]   ;;  %v3328_v27 = vld [vmem:[#allocation6 + $0xc0] ss:$16 sps:$4 sm:$0xff]  }
  0xa7   : > { %v3329_v28 = vld [vmem:[#allocation6 + $0xc8] ss:$16 sps:$4 sm:$0xff]   ;;  %v3330_v29 = vld [vmem:[#allocation6 + $0xe4] ss:$16 sps:$4 sm:$0xff]   ;;  %v3332_v30 = vld [vmem:[#allocation6 + $0xec] ss:$16 sps:$4 sm:$0xff]  }
  0xa8   : > { %1342 = vmatpush1.bf16.msra.mxu0 %v3304_v11  ;;  %1448 = vmatpush1.bf16.msra.mxu1 %v3305_v12  ;;  %v3334_v31 = vld [vmem:[#allocation6 + $0xe0] ss:$16 sps:$4 sm:$0xff]   ;;  %v3335_v32 = vld [vmem:[#allocation6 + $0xe8] ss:$16 sps:$4 sm:$0xff]   ;;  %v3336_v33 = vld [vmem:[#allocation6 + $0x104] ss:$16 sps:$4 sm:$0xff]  }
  0xa9   : > { %1343 = vmatprep.subr.bf16.mxu0 %v3306_v13  ;;  %1449 = vmatprep.subr.bf16.mxu1 %v3308_v14  ;;  %v3338_v34 = vld [vmem:[#allocation6 + $0x10c] ss:$16 sps:$4 sm:$0xff]   ;;  %v3340_v35 = vld [vmem:[#allocation6 + $0x100] ss:$16 sps:$4 sm:$0xff]   ;;  %v3341_v36 = vld [vmem:[#allocation6 + $0x108] ss:$16 sps:$4 sm:$0xff]  }
  0xaa   : > { %v3342_v37 = vld [vmem:[#allocation6 + $0x124] ss:$16 sps:$4 sm:$0xff]   ;;  %v3344_v38 = vld [vmem:[#allocation6 + $0x12c] ss:$16 sps:$4 sm:$0xff]   ;;  %v3346_v39 = vld [vmem:[#allocation6 + $0x120] ss:$16 sps:$4 sm:$0xff]  }
  0xab   : > { %v3347_v40 = vld [vmem:[#allocation6 + $0x128] ss:$16 sps:$4 sm:$0xff]   ;;  %v3348_v41 = vld [vmem:[#allocation6 + $0x144] ss:$16 sps:$4 sm:$0xff]   ;;  %v3350_v42 = vld [vmem:[#allocation6 + $0x14c] ss:$16 sps:$4 sm:$0xff]  }
  0xac   : > { %1344 = vmatpush1.bf16.msra.mxu0 %v3310_v15  ;;  %1450 = vmatpush1.bf16.msra.mxu1 %v3311_v16  ;;  %v3352_v43 = vld [vmem:[#allocation6 + $0x140] ss:$16 sps:$4 sm:$0xff]   ;;  %v3353_v44 = vld [vmem:[#allocation6 + $0x148] ss:$16 sps:$4 sm:$0xff]   ;;  %v3354_v45 = vld [vmem:[#allocation6 + $0x164] ss:$16 sps:$4 sm:$0xff]  }
  0xad   : > { %1345 = vmatprep.subr.bf16.mxu0 %v3312_v17  ;;  %1451 = vmatprep.subr.bf16.mxu1 %v3314_v18  ;;  %v3356_v46 = vld [vmem:[#allocation6 + $0x16c] ss:$16 sps:$4 sm:$0xff]   ;;  %v3358_v47 = vld [vmem:[#allocation6 + $0x160] ss:$16 sps:$4 sm:$0xff]   ;;  %v3359_v48 = vld [vmem:[#allocation6 + $0x168] ss:$16 sps:$4 sm:$0xff]  }
  0xae   : > { %v355_v49 = vld [vmem:[%s3947_s19] sm:$0xff]  ;;  %v357_v50 = vld [vmem:[%s3947_s19 + $0x10] sm:$0xff]  ;;  %v380_v53 = vld [vmem:[#allocation2 + $0x8] sm:$0xff]  ;;  %v3697_v16 = vmov 0.0   ;;  %s3699_s30 = smov 32   ;;  %s3700_s14 = smov 96  }
  0xaf   : > { %v363_v51 = vunpack.c.l.bf16 %v355_v49  ;;  %v364_v52 = vunpack.c.h.bf16 %v355_v49  ;;  %v384_v54 = vld [vmem:[#allocation2 + $0x28] sm:$0xff]  ;;  %v3360_v55 = vld [vmem:[#allocation6 + $0x184] ss:$16 sps:$4 sm:$0xff]   ;;  %v367_v56 = vunpack.c.l.bf16 %v357_v50  ;;  %v368_v57 = vunpack.c.h.bf16 %v357_v50  ;;  %v3364_v1 = vld [vmem:[#allocation6 + $0x180] ss:$16 sps:$4 sm:$0xff]   ;;  %s3117_s12 = sshll.u32 %s3676_s24, 10 }
  0xb0   : > { %1346 = vmatpush1.bf16.msra.mxu0 %v3316_v19  ;;  %1452 = vmatpush1.bf16.msra.mxu1 %v3317_v20  ;;  %v3362_v58 = vld [vmem:[#allocation6 + $0x18c] ss:$16 sps:$4 sm:$0xff]   ;;  %v379_v61 = vld [vmem:[#allocation2] sm:$0xff]  ;;  %v3365_v2 = vld [vmem:[#allocation6 + $0x188] ss:$16 sps:$4 sm:$0xff]   ;;  %s2766_s28 = sshll.u32 %s3961_s9, 4  ;;  %s5297_s20 = scalar_lea.hbm %s5354_s6, %s3117_s12  ;;  %s5299_s28 = int_to_ptr.vmem [resolvable:$true] %s2766_s28 }
  0xb1   : > { %1347 = vmatprep.subr.bf16.mxu0 %v3318_v21  ;;  %1453 = vmatprep.subr.bf16.mxu1 %v3320_v22  ;;  %v396_v59 = vsub.f32 %v364_v52, %v380_v53  ;;  %v400_v60 = vsub.f32 %v368_v57, %v384_v54  ;;  %v383_v63 = vld [vmem:[#allocation2 + $0x20] sm:$0xff]  ;;  %v395_v0 = vsub.f32 %v363_v51, %v379_v61  ;;  %v3368_v6 = vld [vmem:[#allocation6 + $0x1ac] ss:$16 sps:$4 sm:$0xff]   ;;  %v3371_v12 = vld [vmem:[#allocation6 + $0x1a8] ss:$16 sps:$4 sm:$0xff]   ;;  %s2750_s24 = scalar_lea.sflag [#allocation5], %s3943_s16 }
  0xb2   : > { %v399_v4 = vsub.f32 %v367_v56, %v383_v63  ;;  %v3366_v5 = vld [vmem:[#allocation6 + $0x1a4] ss:$16 sps:$4 sm:$0xff]   ;;  %v3370_v9 = vld [vmem:[#allocation6 + $0x1a0] ss:$16 sps:$4 sm:$0xff]   ;;  %v3374_v15 = vld [vmem:[#allocation6 + $0x1cc] ss:$16 sps:$4 sm:$0xff]  }
  0xb3   : > { %v412_v62 = vmul.f32 0.5, %v396_v59  ;;  %v416_v3 = vmul.f32 0.5, %v400_v60  ;;  %v411_v8 = vmul.f32 0.5, %v395_v0  ;;  %v3372_v14 = vld [vmem:[#allocation6 + $0x1c4] ss:$16 sps:$4 sm:$0xff]   ;;  %s3594_s15 = scalar_lea.vmem %s5299_s28, 1024 }
  0xb4   : > { %1348 = vmatpush1.bf16.msra.mxu0 %v3322_v23  ;;  %1454 = vmatpush1.bf16.msra.mxu1 %v3323_v24  ;;  %v415_v11 = vmul.f32 0.5, %v399_v4  ;;  %v3698_v22 = vmov 1.0|1.0   ;;  %v3404_v49 = vld [vmem:[#allocation6 + $0x264] ss:$16 sps:$4 sm:$0xff]   ;;  %v392_v4 = vld [vmem:[#allocation2 + $0x68] sm:$0xff]  ;;  %p3595_p4 = scmp.ne.s32.totalorder %s5299_s28, %s3594_s15 }
  0xb5   : > { %1349 = vmatprep.subr.bf16.mxu0 %v3324_v25  ;;  %1455 = vmatprep.subr.bf16.mxu1 %v3326_v26  ;;  %v428_v7 = vadd.f32 %v412_v62, %v380_v53  ;;  %v432_v10 = vadd.f32 %v416_v3, %v384_v54  ;;  %v427_v13 = vadd.f32 %v411_v8, %v379_v61  ;;  %v3407_v50 = vld [vmem:[#allocation6 + $0x26c] ss:$16 sps:$4 sm:$0xff]   ;;  %v3402_v51 = vld [vmem:[#allocation6 + $0x260] ss:$16 sps:$4 sm:$0xff]   ;;  %v3405_v52 = vld [vmem:[#allocation6 + $0x268] ss:$16 sps:$4 sm:$0xff]  }
  0xb6   : > { %v431_v18 = vadd.f32 %v415_v11, %v383_v63  ;;  %v3410_v53 = vld [vmem:[#allocation6 + $0x284] ss:$16 sps:$4 sm:$0xff]   ;;  %v3413_v54 = vld [vmem:[#allocation6 + $0x28c] ss:$16 sps:$4 sm:$0xff]   ;;  %v3411_v56 = vld [vmem:[#allocation6 + $0x288] ss:$16 sps:$4 sm:$0xff]   ;;  %p3596_p8 = pnand %p3595_p4, %p3882_p6 }
  0xb7   : > { %vm444_vm0 = vcmp.ge.f32.partialorder %v428_v7, 1.0  ;;  %vm448_vm1 = vcmp.ge.f32.partialorder %v432_v10, 1.0  ;;  %vm443_vm3 = vcmp.ge.f32.partialorder %v427_v13, 1.0  ;;  %v3416_v57 = vld [vmem:[#allocation6 + $0x2a4] ss:$16 sps:$4 sm:$0xff]   ;;  %v388_v3 = vld [vmem:[#allocation2 + $0x48] sm:$0xff] }
  0xb8   : > { %1350 = vmatpush1.bf16.msra.mxu0 %v3328_v27  ;;  %1456 = vmatpush1.bf16.msra.mxu1 %v3329_v28  ;;  %v2900_v17 = vsel %vm444_vm0, 1.0, %v3697_v16  ;;  %v2904_v19 = vsel %vm448_vm1, 1.0, %v3697_v16  ;;  %vm3043_vm2 = vmpackc.low %vm448_vm1, %vm444_vm0  ;;  %vm447_vm4 = vcmp.ge.f32.partialorder %v431_v18, 1.0  ;;  %v2899_v23 = vsel %vm443_vm3, 1.0, %v3697_v16  ;;  %v3376_v27 = vld [vmem:[#allocation6 + $0x1c0] ss:$16 sps:$4 sm:$0xff]   ;;  %p3597_p11 = pneg %p3596_p8 }
  0xb9   : > { %1351 = vmatprep.subr.bf16.mxu0 %v3330_v29  ;;  %1457 = vmatprep.subr.bf16.mxu1 %v3332_v30  ;;  %v492_v20 = vsub.f32 1.0, %v2900_v17  ;;  %v496_v21 = vsub.f32 1.0, %v2904_v19  ;;  %v2903_v25 = vsel %vm447_vm4, 1.0, %v3697_v16  ;;  %v491_v26 = vsub.f32 1.0, %v2899_v23  ;;  %v3377_v28 = vld [vmem:[#allocation6 + $0x1c8] ss:$16 sps:$4 sm:$0xff]   ;;  %vm3045_vm5 = vmpackc.low %vm447_vm4, %vm443_vm3 }
  0xba   : > { %3044 = vmatprep.mubr.msk.bf16.mxu0 %vm3043_vm2, %v3698_v22  ;;  %3060 = vmatprep.mubr.msk.bf16.mxu1 %vm3043_vm2, %v3698_v22  ;;  %v495_v30 = vsub.f32 1.0, %v2903_v25  ;;  %v3414_v59 = vld [vmem:[#allocation6 + $0x2a0] ss:$16 sps:$4 sm:$0xff]   ;;  %v3417_v60 = vld [vmem:[#allocation6 + $0x2a8] ss:$16 sps:$4 sm:$0xff]   ;;  %s3701_s17 = smov [#allocation11]  }
  0xbb   : > { %v508_v24 = vmul.f32 %v492_v20, %v428_v7  ;;  %v512_v29 = vmul.f32 %v496_v21, %v432_v10  ;;  %v3422_v61 = vld [vmem:[#allocation6 + $0x2c4] ss:$16 sps:$4 sm:$0xff]   ;;  %v3425_v62 = vld [vmem:[#allocation6 + $0x2cc] ss:$16 sps:$4 sm:$0xff]   ;;  %v3426_v23 = vld [vmem:[#allocation6 + $0x2e0] ss:$16 sps:$4 sm:$0xff]  }
  0xbc   : > { %1352 = vmatpush1.bf16.msra.mxu0 %v3334_v31  ;;  %1458 = vmatpush1.bf16.msra.mxu1 %v3335_v32  ;;  %v3378_v31 = vld [vmem:[#allocation6 + $0x1e4] ss:$16 sps:$4 sm:$0xff]   ;;  %v3380_v32 = vld [vmem:[#allocation6 + $0x1ec] ss:$16 sps:$4 sm:$0xff]   ;;  %s3598_s18 = sshll.u32 %s3701_s17, 4  ;;  %s3599_s18 = int_to_ptr.vmem [resolvable:$false] %s3598_s18 }
  0xbd   : > { %1353 = vmatprep.subr.bf16.mxu0 %v3336_v33  ;;  %1459 = vmatprep.subr.bf16.mxu1 %v3338_v34  ;;  %524 = vst [vmem:[#allocation2 + $0x8] sm:$0xff] %v508_v24  ;;  %v507_v33 = vmul.f32 %v491_v26, %v427_v13  ;;  %528 = vst [vmem:[#allocation2 + $0x28] sm:$0xff] %v512_v29  ;;  %v511_v34 = vmul.f32 %v495_v30, %v431_v18  ;;  %v359_v63 = vld [vmem:[%s3947_s19 + $0x20] sm:$0xff]  ;;  %v361_v0 = vld [vmem:[%s3947_s19 + $0x30] sm:$0xff]  ;;  %p3601_p13 = scmp.lt.s32.totalorder %s5299_s28, %s3599_s18 }
  0xbe   : > { %v387_v7 = vld [vmem:[#allocation2 + $0x40] sm:$0xff]  ;;  %v3431_v21 = vld [vmem:[#allocation6 + $0x2ec] ss:$16 sps:$4 sm:$0xff]  }
  0xbf   : > { %523 = vst [vmem:[#allocation2] sm:$0xff] %v507_v33  ;;  %527 = vst [vmem:[#allocation2 + $0x20] sm:$0xff] %v511_v34  ;;  %v391_v8 = vld [vmem:[#allocation2 + $0x60] sm:$0xff]  ;;  %v3437_v30 = vld [vmem:[#allocation6 + $0x30c] ss:$16 sps:$4 sm:$0xff]  }
  0xc0   : > { %1354 = vmatpush1.bf16.msra.mxu0 %v3340_v35  ;;  %1460 = vmatpush1.bf16.msra.mxu1 %v3341_v36  ;;  %v3382_v35 = vld [vmem:[#allocation6 + $0x1e0] ss:$16 sps:$4 sm:$0xff]   ;;  %v3383_v36 = vld [vmem:[#allocation6 + $0x1e8] ss:$16 sps:$4 sm:$0xff]   ;;  %v3428_v20 = vld [vmem:[#allocation6 + $0x2e4] ss:$16 sps:$4 sm:$0xff]  }
  0xc1   : > { %1355 = vmatprep.subr.bf16.mxu0 %v3342_v37  ;;  %1461 = vmatprep.subr.bf16.mxu1 %v3344_v38  ;;  %v3386_v37 = vld [vmem:[#allocation6 + $0x204] ss:$16 sps:$4 sm:$0xff]   ;;  %v3389_v38 = vld [vmem:[#allocation6 + $0x20c] ss:$16 sps:$4 sm:$0xff]   ;;  %v3420_v13 = vld [vmem:[#allocation6 + $0x2c0] ss:$16 sps:$4 sm:$0xff]  }
  0xc2   : > { %v3434_v29 = vld [vmem:[#allocation6 + $0x304] ss:$16 sps:$4 sm:$0xff]  }
  0xc4   : > { %1356 = vmatpush1.bf16.msra.mxu0 %v3346_v39  ;;  %1462 = vmatpush1.bf16.msra.mxu1 %v3347_v40  ;;  %v3384_v39 = vld [vmem:[#allocation6 + $0x200] ss:$16 sps:$4 sm:$0xff]   ;;  %v3387_v40 = vld [vmem:[#allocation6 + $0x208] ss:$16 sps:$4 sm:$0xff]  }
  0xc5   : > { %1357 = vmatprep.subr.bf16.mxu0 %v3348_v41  ;;  %1463 = vmatprep.subr.bf16.mxu1 %v3350_v42  ;;  %v3392_v41 = vld [vmem:[#allocation6 + $0x224] ss:$16 sps:$4 sm:$0xff]   ;;  %v3395_v42 = vld [vmem:[#allocation6 + $0x22c] ss:$16 sps:$4 sm:$0xff]  }
  0xc8   : > { %1358 = vmatpush1.bf16.msra.mxu0 %v3352_v43  ;;  %1464 = vmatpush1.bf16.msra.mxu1 %v3353_v44  ;;  %v3390_v43 = vld [vmem:[#allocation6 + $0x220] ss:$16 sps:$4 sm:$0xff]   ;;  %v3393_v44 = vld [vmem:[#allocation6 + $0x228] ss:$16 sps:$4 sm:$0xff]  }
  0xc9   : > { %1359 = vmatprep.subr.bf16.mxu0 %v3354_v45  ;;  %1465 = vmatprep.subr.bf16.mxu1 %v3356_v46  ;;  %v3398_v45 = vld [vmem:[#allocation6 + $0x244] ss:$16 sps:$4 sm:$0xff]   ;;  %v3401_v46 = vld [vmem:[#allocation6 + $0x24c] ss:$16 sps:$4 sm:$0xff]  }
  0xcc   : > { %1360 = vmatpush1.bf16.msra.mxu0 %v3358_v47  ;;  %1466 = vmatpush1.bf16.msra.mxu1 %v3359_v48  ;;  %v3396_v47 = vld [vmem:[#allocation6 + $0x240] ss:$16 sps:$4 sm:$0xff]   ;;  %v3399_v48 = vld [vmem:[#allocation6 + $0x248] ss:$16 sps:$4 sm:$0xff]  }
  0xcd   : > { %1361 = vmatprep.subr.bf16.mxu0 %v3360_v55  ;;  %1467 = vmatprep.subr.bf16.mxu1 %v3362_v58  ;;  %v3408_v55 = vld [vmem:[#allocation6 + $0x280] ss:$16 sps:$4 sm:$0xff]   ;;  %v3419_v58 = vld [vmem:[#allocation6 + $0x2ac] ss:$16 sps:$4 sm:$0xff]  }
  0xd0   : > { %1362 = vmatpush1.bf16.msra.mxu0 %v3364_v1  ;;  %1468 = vmatpush1.bf16.msra.mxu1 %v3365_v2  ;;  %v372_v1 = vunpack.c.h.bf16 %v359_v63  ;;  %v376_v2 = vunpack.c.h.bf16 %v361_v0 }
  0xd1   : > { %1363 = vmatprep.subr.bf16.mxu0 %v3366_v5  ;;  %1469 = vmatprep.subr.bf16.mxu1 %v3368_v6  ;;  %v371_v5 = vunpack.c.l.bf16 %v359_v63  ;;  %v375_v6 = vunpack.c.l.bf16 %v361_v0 }
  0xd2   : > { %v408_v10 = vsub.f32 %v376_v2, %v392_v4 }
  0xd3   : > { %v403_v11 = vsub.f32 %v371_v5, %v387_v7 }
  0xd4   : > { %1364 = vmatpush1.bf16.msra.mxu0 %v3370_v9  ;;  %1470 = vmatpush1.bf16.msra.mxu1 %v3371_v12  ;;  %v404_v9 = vsub.f32 %v372_v1, %v388_v3  ;;  %v407_v12 = vsub.f32 %v375_v6, %v391_v8  ;;  %v424_v17 = vmul.f32 0.5, %v408_v10  ;;  %v3999_v1 = vld [vmem:[#allocation2 + $0x50] sm:$0xff] }
  0xd5   : > { %1365 = vmatprep.subr.bf16.mxu0 %v3372_v14  ;;  %1471 = vmatprep.subr.bf16.mxu1 %v3374_v15  ;;  %v3423_v14 = vld [vmem:[#allocation6 + $0x2c8] ss:$16 sps:$4 sm:$0xff]   ;;  %v419_v18 = vmul.f32 0.5, %v403_v11  ;;  %v4001_v6 = vld [vmem:[#allocation2 + $0x70] sm:$0xff] }
  0xd6   : > { %v420_v15 = vmul.f32 0.5, %v404_v9  ;;  %v423_v19 = vmul.f32 0.5, %v407_v12  ;;  %v440_v25 = vadd.f32 %v424_v17, %v392_v4  ;;  %v3441_v12 = vld [vmem:[#allocation6 + $0x328] ss:$16 sps:$4 sm:$0xff]  }
  0xd7   : > { %v435_v26 = vadd.f32 %v419_v18, %v387_v7  ;;  %v3438_v7 = vld [vmem:[#allocation6 + $0x320] ss:$16 sps:$4 sm:$0xff]   ;;  %v3446_v18 = vld [vmem:[#allocation6 + $0x344] ss:$16 sps:$4 sm:$0xff]  }
  0xd8   : > { %1366 = vmatpush1.bf16.msra.mxu0 %v3376_v27  ;;  %1472 = vmatpush1.bf16.msra.mxu1 %v3377_v28  ;;  %v436_v24 = vadd.f32 %v420_v15, %v388_v3  ;;  %v439_v27 = vadd.f32 %v423_v19, %v391_v8  ;;  %v3429_v28 = vld [vmem:[#allocation6 + $0x2e8] ss:$16 sps:$4 sm:$0xff]   ;;  %vm456_vm7 = vcmp.ge.f32.partialorder %v440_v25, 1.0  ;;  %v3449_v19 = vld [vmem:[#allocation6 + $0x34c] ss:$16 sps:$4 sm:$0xff]  }
  0xd9   : > { %1367 = vmatprep.subr.bf16.mxu0 %v3378_v31  ;;  %1473 = vmatprep.subr.bf16.mxu1 %v3380_v32  ;;  %vm451_vm8 = vcmp.ge.f32.partialorder %v435_v26, 1.0  ;;  %v356_v31 = vld [vmem:[%s3947_s19 + $0x8] sm:$0xff]  ;;  %v358_v32 = vld [vmem:[%s3947_s19 + $0x18] sm:$0xff]  ;;  %v2912_v34 = vsel %vm456_vm7, 1.0, %v3697_v16 }
  0xda   : > { %vm452_vm6 = vcmp.ge.f32.partialorder %v436_v24, 1.0  ;;  %vm455_vm9 = vcmp.ge.f32.partialorder %v439_v27, 1.0 }
  0xdb   : > { %v2908_v33 = vsel %vm452_vm6, 1.0, %v3697_v16  ;;  %vm3047_vm10 = vmpackc.low %vm456_vm7, %vm452_vm6 }
  0xdc   : > { %1368 = vmatpush1.bf16.msra.mxu0 %v3382_v35  ;;  %1474 = vmatpush1.bf16.msra.mxu1 %v3383_v36  ;;  %v2907_v35 = vsel %vm451_vm8, 1.0, %v3697_v16  ;;  %v2911_v36 = vsel %vm455_vm9, 1.0, %v3697_v16  ;;  %vm3049_vm11 = vmpackc.low %vm455_vm9, %vm451_vm8  ;;  %vm1561_vm8 = vcmask 261120  }
  0xdd   : > { %1390 = vmatprep.subr.bf16.mxu0 %v3386_v37  ;;  %1496 = vmatprep.subr.bf16.mxu1 %v3389_v38  ;;  %v3988_v37 = vld [vmem:[#allocation2 + $0x18] sm:$0xff]  ;;  %v360_v38 = vld [vmem:[%s3947_s19 + $0x28] sm:$0xff] }
  0xde   : > { %v373_v5 = vunpack.c.l.bf16 %v360_v38 }
  0xdf   : > { %3046 = vmatmul.mubr.msk.bf16.vlgmr.msra.gmra.mrb[0].mxu0 %vm3045_vm5, %v3698_v22  ;;  %3062 = vmatmul.mubr.msk.bf16.vlgmr.msra.gmra.mrb[0].mxu1 %vm3045_vm5, %v3698_v22 }
  0xe0   : > { %1391 = vmatpush1.bf16.msra.mxu0 %v3384_v39  ;;  %1497 = vmatpush1.bf16.msra.mxu1 %v3387_v40  ;;  %v500_v39 = vsub.f32 1.0, %v2908_v33  ;;  %v504_v40 = vsub.f32 1.0, %v2912_v34  ;;  %v405_v17 = vsub.f32 %v373_v5, %v3999_v1  ;;  %v3452_v33 = vld [vmem:[#allocation6 + $0x364] ss:$16 sps:$4 sm:$0xff]   ;;  %v3462_v5 = vld [vmem:[#allocation6 + $0x3a0] ss:$16 sps:$4 sm:$0xff]  }
  0xe1   : > { %1392 = vmatprep.subr.bf16.mxu0 %v3392_v41  ;;  %1498 = vmatprep.subr.bf16.mxu1 %v3395_v42  ;;  %v499_v41 = vsub.f32 1.0, %v2907_v35  ;;  %v503_v42 = vsub.f32 1.0, %v2911_v36  ;;  %v3455_v36 = vld [vmem:[#allocation6 + $0x36c] ss:$16 sps:$4 sm:$0xff]  }
  0xe2   : > { %3048 = vmatprep.mubr.msk.bf16.mxu0 %vm3047_vm10, %v3698_v22  ;;  %3064 = vmatprep.mubr.msk.bf16.mxu1 %vm3047_vm10, %v3698_v22 }
  0xe4   : > { %1393 = vmatpush1.bf16.msra.mxu0 %v3390_v43  ;;  %1499 = vmatpush1.bf16.msra.mxu1 %v3393_v44  ;;  %v386_v43 = vld [vmem:[#allocation2 + $0x38] sm:$0xff] }
  0xe5   : > { %1394 = vmatprep.subr.bf16.mxu0 %v3398_v45  ;;  %1500 = vmatprep.subr.bf16.mxu1 %v3401_v46  ;;  %v362_v44 = vld [vmem:[%s3947_s19 + $0x38] sm:$0xff]  ;;  %v365_v45 = vunpack.c.l.bf16 %v356_v31  ;;  %v366_v46 = vunpack.c.h.bf16 %v356_v31  ;;  %s3600_s19 = scalar_lea.vmem %s3599_s18, 2048 }
  0xe6   : > { %v378_v0 = vunpack.c.h.bf16 %v362_v44  ;;  %v377_v11 = vunpack.c.l.bf16 %v362_v44  ;;  %p3602_p0 = scmp.lt.s32.totalorder %s3600_s19, %s3594_s15 }
  0xe7   : > { %3050 = vmatmul.mubr.msk.bf16.gmra.mrb[4].mxu0 %vm3049_vm11, %v3698_v22  ;;  %3066 = vmatmul.mubr.msk.bf16.gmra.mrb[4].mxu1 %vm3049_vm11, %v3698_v22 }
  0xe8   : > { %1395 = vmatpush1.bf16.msra.mxu0 %v3396_v47  ;;  %1501 = vmatpush1.bf16.msra.mxu1 %v3399_v48  ;;  %v369_v47 = vunpack.c.l.bf16 %v358_v32  ;;  %v370_v48 = vunpack.c.h.bf16 %v358_v32  ;;  %p3603_p5 = por %p3602_p0, %p3601_p13 }
  0xe9   : > { %1396 = vmatprep.subr.bf16.mxu0 %v3404_v49  ;;  %1502 = vmatprep.subr.bf16.mxu1 %v3407_v50  ;;  %v381_v49 = vld [vmem:[#allocation2 + $0x10] sm:$0xff] }
  0xea   : > { %v385_v50 = vld [vmem:[#allocation2 + $0x30] sm:$0xff]  ;;  %v402_v63 = vsub.f32 %v370_v48, %v386_v43  ;;  %v397_v2 = vsub.f32 %v365_v45, %v381_v49  ;;  %v3453_v48 = vld [vmem:[#allocation6 + $0x368] ss:$16 sps:$4 sm:$0xff]   ;;  %p3604_p9 = pnand %p3603_p5, %p3597_p11 }
  0xeb   : > { %v401_v3 = vsub.f32 %v369_v47, %v385_v50  ;;  %v3450_v47 = vld [vmem:[#allocation6 + $0x360] ss:$16 sps:$4 sm:$0xff]  }
  0xec   : > { %1397 = vmatpush1.bf16.msra.mxu0 %v3402_v51  ;;  %1503 = vmatpush1.bf16.msra.mxu1 %v3405_v52  ;;  %v390_v51 = vld [vmem:[#allocation2 + $0x58] sm:$0xff]  ;;  %v3432_v52 = vld [vmem:[#allocation6 + $0x300] ss:$16 sps:$4 sm:$0xff]   ;;  %v418_v9 = vmul.f32 0.5, %v402_v63  ;;  %v3464_v63 = vld [vmem:[#allocation6 + $0x3a4] ss:$16 sps:$4 sm:$0xff]  }
  0xed   : > { %1398 = vmatprep.subr.bf16.mxu0 %v3410_v53  ;;  %1504 = vmatprep.subr.bf16.mxu1 %v3413_v54  ;;  %v3435_v53 = vld [vmem:[#allocation6 + $0x308] ss:$16 sps:$4 sm:$0xff]   ;;  %v516_v54 = vmul.f32 %v500_v39, %v436_v24  ;;  %v409_v24 = vsub.f32 %v377_v11, %v4001_v6  ;;  %v3476_v11 = vld [vmem:[#allocation6 + $0x3e4] ss:$16 sps:$4 sm:$0xff]  }
  0xef   : > { %532 = vst [vmem:[#allocation2 + $0x48] sm:$0xff] %v516_v54  ;;  %v425_v32 = vmul.f32 0.5, %v409_v24  ;;  %v3461_v54 = vld [vmem:[#allocation6 + $0x38c] ss:$16 sps:$4 sm:$0xff]  }
  0xf0   : > { %1399 = vmatpush1.bf16.msra.mxu0 %v3408_v55  ;;  %1505 = vmatpush1.bf16.msra.mxu1 %v3411_v56  ;;  %v520_v55 = vmul.f32 %v504_v40, %v440_v25  ;;  %v515_v56 = vmul.f32 %v499_v41, %v435_v26  ;;  %v3444_v25 = vld [vmem:[#allocation6 + $0x340] ss:$16 sps:$4 sm:$0xff]  }
  0xf1   : > { %1400 = vmatprep.subr.bf16.mxu0 %v3416_v57  ;;  %1506 = vmatprep.subr.bf16.mxu1 %v3419_v58  ;;  %v374_v57 = vunpack.c.h.bf16 %v360_v38  ;;  %v394_v58 = vld [vmem:[#allocation2 + $0x78] sm:$0xff] }
  0xf2   : > { %536 = vst [vmem:[#allocation2 + $0x68] sm:$0xff] %v520_v55  ;;  %531 = vst [vmem:[#allocation2 + $0x40] sm:$0xff] %v515_v56  ;;  %v410_v10 = vsub.f32 %v378_v0, %v394_v58  ;;  %v441_v56 = vadd.f32 %v425_v32, %v4001_v6  ;;  %v3467_v0 = vld [vmem:[#allocation6 + $0x3ac] ss:$16 sps:$4 sm:$0xff]   ;;  %v3465_v6 = vld [vmem:[#allocation6 + $0x3a8] ss:$16 sps:$4 sm:$0xff]  }
  0xf3   : > { %v406_v4 = vsub.f32 %v374_v57, %v390_v51 }
  0xf4   : > { %1401 = vmatpush1.bf16.msra.mxu0 %v3414_v59  ;;  %1507 = vmatpush1.bf16.msra.mxu1 %v3417_v60  ;;  %v3440_v59 = vld [vmem:[#allocation6 + $0x324] ss:$16 sps:$4 sm:$0xff]   ;;  %v3443_v60 = vld [vmem:[#allocation6 + $0x32c] ss:$16 sps:$4 sm:$0xff]   ;;  %vm457_vm4 = vcmp.ge.f32.partialorder %v441_v56, 1.0 }
  0xf5   : > { %1402 = vmatprep.subr.bf16.mxu0 %v3422_v61  ;;  %1508 = vmatprep.subr.bf16.mxu1 %v3425_v62  ;;  %v519_v61 = vmul.f32 %v503_v42, %v439_v27  ;;  %v398_v62 = vsub.f32 %v366_v46, %v3988_v37  ;;  %v422_v15 = vmul.f32 0.5, %v406_v4 }
  0xf7   : > { %535 = vst [vmem:[#allocation2 + $0x60] sm:$0xff] %v519_v61  ;;  %v414_v8 = vmul.f32 0.5, %v398_v62  ;;  %v2913_v62 = vsel %vm457_vm4, 1.0, %v3697_v16 }
  0xf8   : > { %1403 = vmatpush1.bf16.msra.mxu0 %v3420_v13  ;;  %1509 = vmatpush1.bf16.msra.mxu1 %v3423_v14  ;;  %v413_v13 = vmul.f32 0.5, %v397_v2  ;;  %v417_v14 = vmul.f32 0.5, %v401_v3  ;;  %v505_v2 = vsub.f32 1.0, %v2913_v62 }
  0xf9   : > { %1404 = vmatprep.subr.bf16.mxu0 %v3428_v20  ;;  %1510 = vmatprep.subr.bf16.mxu1 %v3431_v21  ;;  %v430_v20 = vadd.f32 %v414_v8, %v3988_v37  ;;  %v434_v21 = vadd.f32 %v418_v9, %v386_v43  ;;  %v3473_v8 = vld [vmem:[#allocation6 + $0x3cc] ss:$16 sps:$4 sm:$0xff]   ;;  %v3468_v9 = vld [vmem:[#allocation6 + $0x3c0] ss:$16 sps:$4 sm:$0xff]  }
  0xfa   : > { %v4006_v26 = vadd.f32 %v413_v13, %v381_v49  ;;  %v4008_v27 = vadd.f32 %v417_v14, %v385_v50  ;;  %v521_v4 = vmul.f32 %v505_v2, %v441_v56  ;;  %v3474_v13 = vld [vmem:[#allocation6 + $0x3e0] ss:$16 sps:$4 sm:$0xff]   ;;  %v3477_v14 = vld [vmem:[#allocation6 + $0x3e8] ss:$16 sps:$4 sm:$0xff]  }
  0xfb   : > { %vm446_vm12 = vcmp.ge.f32.partialorder %v430_v20, 1.0  ;;  %vm450_vm13 = vcmp.ge.f32.partialorder %v434_v21, 1.0 }
  0xfc   : > { %1405 = vmatpush1.bf16.msra.mxu0 %v3426_v23  ;;  %1511 = vmatpush1.bf16.msra.mxu1 %v3429_v28  ;;  %v426_v23 = vmul.f32 0.5, %v410_v10  ;;  %v4010_v28 = vadd.f32 %v422_v15, %v390_v51  ;;  %v2902_v34 = vsel %vm446_vm12, 1.0, %v3697_v16  ;;  %v2906_v35 = vsel %vm450_vm13, 1.0, %v3697_v16  ;;  %vm3051_vm14 = vmpackc.low %vm450_vm13, %vm446_vm12  ;;  %537 = vst [vmem:[#allocation2 + $0x70] sm:$0xff] %v521_v4  ;;  %v3471_v10 = vld [vmem:[#allocation6 + $0x3c8] ss:$16 sps:$4 sm:$0xff]  }
  0xfd   : > { %1406 = vmatprep.subr.bf16.mxu0 %v3434_v29  ;;  %1512 = vmatprep.subr.bf16.mxu1 %v3437_v30  ;;  %v421_v29 = vmul.f32 0.5, %v405_v17  ;;  %v3447_v30 = vld [vmem:[#allocation6 + $0x348] ss:$16 sps:$4 sm:$0xff]   ;;  %vm445_vm15 = vcmp.ge.f32.partialorder %v4006_v26, 1.0  ;;  %vm449_vm0 = vcmp.ge.f32.partialorder %v4008_v27, 1.0  ;;  %v494_v37 = vsub.f32 1.0, %v2902_v34 }
  0xfe   : > { %v4012_v31 = vadd.f32 %v426_v23, %v394_v58  ;;  %v498_v38 = vsub.f32 1.0, %v2906_v35  ;;  %v2901_v39 = vsel %vm445_vm15, 1.0, %v3697_v16  ;;  %v2905_v40 = vsel %vm449_vm0, 1.0, %v3697_v16  ;;  %3052 = vmatprep.mubr.msk.bf16.mxu0 %vm3051_vm14, %v3698_v22  ;;  %3068 = vmatprep.mubr.msk.bf16.mxu1 %vm3051_vm14, %v3698_v22  ;;  %vm3053_vm5 = vmpackc.low %vm449_vm0, %vm445_vm15  ;;  %v1558_v4 = vld [vmem:[#allocation8 + $0x8] sm:$0xff] }
  0xff   : > { %v493_v41 = vsub.f32 1.0, %v2901_v39  ;;  %v497_v42 = vsub.f32 1.0, %v2905_v40  ;;  %vm454_vm1 = vcmp.ge.f32.partialorder %v4010_v28, 1.0  ;;  %v510_v43 = vmul.f32 %v494_v37, %v430_v20 }
 0x100   : > { %1407 = vmatpush1.bf16.msra.mxu0 %v3432_v52  ;;  %1513 = vmatpush1.bf16.msra.mxu1 %v3435_v53  ;;  %vm458_vm2 = vcmp.ge.f32.partialorder %v4012_v31, 1.0  ;;  %v514_v44 = vmul.f32 %v498_v38, %v434_v21  ;;  %v2910_v45 = vsel %vm454_vm1, 1.0, %v3697_v16  ;;  %v3458_v53 = vld [vmem:[#allocation6 + $0x384] ss:$16 sps:$4 sm:$0xff]   ;;  %v437_v55 = vadd.f32 %v421_v29, %v3999_v1 }
 0x101   : > { %1408 = vmatprep.subr.bf16.mxu0 %v3440_v59  ;;  %1514 = vmatprep.subr.bf16.mxu1 %v3443_v60  ;;  %v2914_v46 = vsel %vm458_vm2, 1.0, %v3697_v16  ;;  %v509_v49 = vmul.f32 %v493_v41, %v4006_v26  ;;  %v513_v50 = vmul.f32 %v497_v42, %v4008_v27  ;;  %v502_v51 = vsub.f32 1.0, %v2910_v45  ;;  %526 = vst [vmem:[#allocation2 + $0x18] sm:$0xff] %v510_v43  ;;  %v3456_v59 = vld [vmem:[#allocation6 + $0x380] ss:$16 sps:$4 sm:$0xff]   ;;  %vm3055_vm6 = vmpackc.low %vm458_vm2, %vm454_vm1 }
 0x102   : > { %v506_v52 = vsub.f32 1.0, %v2914_v46  ;;  %530 = vst [vmem:[#allocation2 + $0x38] sm:$0xff] %v514_v44  ;;  %vm453_vm3 = vcmp.ge.f32.partialorder %v437_v55, 1.0  ;;  %v3459_v60 = vld [vmem:[#allocation6 + $0x388] ss:$16 sps:$4 sm:$0xff]   ;;  %v677_v15 = vlaneseq }
 0x103   : > { %525 = vst [vmem:[#allocation2 + $0x10] sm:$0xff] %v509_v49  ;;  %529 = vst [vmem:[#allocation2 + $0x30] sm:$0xff] %v513_v50  ;;  %v518_v57 = vmul.f32 %v502_v51, %v4010_v28  ;;  %v2909_v61 = vsel %vm453_vm3, 1.0, %v3697_v16 }
 0x104   : > { %1409 = vmatpush1.bf16.msra.mxu0 %v3438_v7  ;;  %1515 = vmatpush1.bf16.msra.mxu1 %v3441_v12  ;;  %v522_v58 = vmul.f32 %v506_v52, %v4012_v31  ;;  %v501_v1 = vsub.f32 1.0, %v2909_v61  ;;  %v3470_v7 = vld [vmem:[#allocation6 + $0x3c4] ss:$16 sps:$4 sm:$0xff]   ;;  %v3479_v12 = vld [vmem:[#allocation6 + $0x3ec] ss:$16 sps:$4 sm:$0xff]   ;;  %vm3057_vm7 = vmpackc.low %vm457_vm4, %vm453_vm3  ;;  %v4063_v17 = vshrl.u32 %v677_v15, 7 }
 0x105   : > { %1410 = vmatprep.subr.bf16.mxu0 %v3446_v18  ;;  %1516 = vmatprep.subr.bf16.mxu1 %v3449_v19  ;;  %534 = vst [vmem:[#allocation2 + $0x58] sm:$0xff] %v518_v57  ;;  %v675_v19 = vld [vmem:[%s5350_s2] sm:$0xf] }
 0x106   : > { %538 = vst [vmem:[#allocation2 + $0x78] sm:$0xff] %v522_v58  ;;  %v517_v3 = vmul.f32 %v501_v1, %v437_v55  ;;  %5448 = vst [vmem:[#allocation18_spill] sm:$0xff] %v4063_v17  ;;  %v4066_v18 = vsub.s32 0, %v4063_v17  ;;  %v4072_v20 = vsub.s32 2, %v4063_v17  ;;  %v4078_v21 = vsub.s32 3, %v4063_v17 }
 0x108   : > { %1411 = vmatpush1.bf16.msra.mxu0 %v3444_v25  ;;  %1517 = vmatpush1.bf16.msra.mxu1 %v3447_v30  ;;  %533 = vst [vmem:[#allocation2 + $0x50] sm:$0xff] %v517_v3  ;;  %5449 = vst [vmem:[#allocation19_spill] sm:$0xff] %v4066_v18  ;;  %v680_v23 = vrot.slane %v675_v19, %v4066_v18  ;;  %v688_v24 = vrot.slane %v675_v19, %v4072_v20  ;;  %v1557_v3 = vld [vmem:[#allocation8] sm:$0xff] }
 0x109   : > { %1412 = vmatprep.subr.bf16.mxu0 %v3452_v33  ;;  %1518 = vmatprep.subr.bf16.mxu1 %v3455_v36  ;;  %5450 = vst [vmem:[#allocation20_spill] sm:$0xff] %v4072_v20  ;;  %5452 = vst [vmem:[#allocation22_spill] sm:$0xff] %v4078_v21  ;;  %v692_v28 = vrot.slane %v675_v19, %v4078_v21 }
 0x10c   : > { %1413 = vmatpush1.bf16.msra.mxu0 %v3450_v47  ;;  %1519 = vmatpush1.bf16.msra.mxu1 %v3453_v48 }
 0x10d   : > { %1414 = vmatprep.subr.bf16.mxu0 %v3458_v53  ;;  %1520 = vmatprep.subr.bf16.mxu1 %v3461_v54 }
 0x110   : > { %1415 = vmatpush1.bf16.msra.mxu0 %v3456_v59  ;;  %1521 = vmatpush1.bf16.msra.mxu1 %v3459_v60 }
 0x111   : > { %1416 = vmatprep.subr.bf16.mxu0 %v3464_v63  ;;  %1522 = vmatprep.subr.bf16.mxu1 %v3467_v0 }
 0x114   : > { %1417 = vmatpush1.bf16.msra.mxu0 %v3462_v5  ;;  %1523 = vmatpush1.bf16.msra.mxu1 %v3465_v6  ;;  %v1559_v5 = vld [vmem:[#allocation8 + $0x10] sm:$0xff]  ;;  %v1560_v6 = vld [vmem:[#allocation8 + $0x18] sm:$0xff] }
 0x115   : > { %1418 = vmatprep.subr.bf16.mxu0 %v3470_v7  ;;  %1524 = vmatprep.subr.bf16.mxu1 %v3473_v8  ;;  %v2221_v7 = vld [vmem:[#allocation8 + $0x40] sm:$0xff]  ;;  %v2222_v8 = vld [vmem:[#allocation8 + $0x48] sm:$0xff] }
 0x118   : > { %1419 = vmatpush1.bf16.msra.mxu0 %v3468_v9  ;;  %1525 = vmatpush1.bf16.msra.mxu1 %v3471_v10  ;;  %v2223_v9 = vld [vmem:[#allocation8 + $0x50] sm:$0xff]  ;;  %v2224_v10 = vld [vmem:[#allocation8 + $0x58] sm:$0xff] }
 0x119   : > { %1420 = vmatprep.subr.bf16.mxu0 %v3476_v11  ;;  %1526 = vmatprep.subr.bf16.mxu1 %v3479_v12 }
 0x11c   : > { %1421 = vmatpush1.bf16.msra.mxu0 %v3474_v13  ;;  %1527 = vmatpush1.bf16.msra.mxu1 %v3477_v14 }
 0x11f   : > { %3054 = vmatmul.mubr.msk.bf16.vlgmr.msra.gmra.mrb[0].mxu0 %vm3053_vm5, %v3698_v22  ;;  %3070 = vmatmul.mubr.msk.bf16.vlgmr.msra.gmra.mrb[0].mxu1 %vm3053_vm5, %v3698_v22 }
 0x120   : > { %3056 = vmatprep.mubr.msk.bf16.mxu0 %vm3055_vm6, %v3698_v22  ;;  %3072 = vmatprep.mubr.msk.bf16.mxu1 %vm3055_vm6, %v3698_v22 }
 0x127   : > { %3058 = vmatmul.mubr.msk.bf16.gmra.mrb[4].mxu0 %vm3057_vm7, %v3698_v22  ;;  %3074 = vmatmul.mubr.msk.bf16.gmra.mrb[4].mxu1 %vm3057_vm7, %v3698_v22  ;;  %v4075_v22 = vsub.s32 1, %v4063_v17 }
 0x128   : > { %1638 = vmatprep.mubr.f32.mxu0 %v3697_v16  ;;  %1727 = vmatprep.mubr.f32.mxu1 %v3697_v16 }
 0x129   : > { %5451 = vst [vmem:[#allocation21_spill] sm:$0xff] %v4075_v22  ;;  %v684_v27 = vrot.slane %v675_v19, %v4075_v22  ;;  %v4227_v19 = vand.u32 127, %v677_v15 }
 0x12b   : > { %vm1786_vm9 = vcmp.lt.s32.totalorder %v4227_v19, 32  ;;  %vm1915_vm10 = vcmp.lt.s32.totalorder %v4227_v19, 96 }
 0x1f2   : > { %v1424_v25 = vpop.f32.mrb[0].mxu0  ;;  %v1530_v26 = vpop.f32.mrb[0].mxu1 }
 0x1f3   : > { %v4084_v29 = vadd.f32 %v1424_v25, %v680_v23  ;;  %v1426_v30 = vpop.f32.mrb[1].mxu0  ;;  %v1532_v31 = vpop.f32.mrb[1].mxu1  ;;  %v4086_v34 = vadd.f32 %v1530_v26, %v688_v24 }
 0x1f4   : > { %v1428_v32 = vpop.f32.mrb[2].mxu0  ;;  %v1534_v33 = vpop.f32.mrb[2].mxu1  ;;  %v4094_v39 = vadd.f32 %v1426_v30, %v684_v27  ;;  %v4096_v40 = vadd.f32 %v1532_v31, %v692_v28 }
 0x1f5   : > { %v4088_v35 = vadd.f32 %v1428_v32, %v680_v23  ;;  %v4090_v36 = vadd.f32 %v1534_v33, %v688_v24  ;;  %v1430_v37 = vpop.f32.mrb[3].mxu0  ;;  %v1536_v38 = vpop.f32.mrb[3].mxu1  ;;  %1980 = vrot.lane.b32.xlu0 %v4084_v29, %s3699_s30 }
 0x1f6   : > { %v4098_v41 = vadd.f32 %v1430_v37, %v684_v27  ;;  %v4100_v42 = vadd.f32 %v1536_v38, %v692_v28 }
 0x1f7   : > { %5453 = vst [vmem:[#allocation23_spill] sm:$0xff] %v4088_v35  ;;  %1982 = vrot.lane.b32.xlu1 %v4088_v35, %s3699_s30  ;;  %v3128_v43 = vpack.c.bf16 %v4090_v36, %v4086_v34  ;;  %v3120_v44 = vpack.c.bf16 %v4088_v35, %v4084_v29 }
 0x1f8   : > { %5454 = vst [vmem:[#allocation24_spill] sm:$0xff] %v4098_v41  ;;  %v3118_v45 = vpack.c.bf16 %v4098_v41, %v4094_v39  ;;  %v3126_v46 = vpack.c.bf16 %v4100_v42, %v4096_v40 }
 0x1f9   : > { %1996 = vrot.lane.b32.xlu0 %v4086_v34, %s3699_s30 }
 0x1fa   : > { %v1434_v47 = vpop.f32.mrb[4].mxu0  ;;  %v1540_v48 = vpop.f32.mrb[4].mxu1  ;;  %3119 = vmatprep.subr.bf16.mxu0 %v3118_v45  ;;  %3127 = vmatprep.subr.bf16.mxu1 %v3126_v46 }
 0x1fb   : > { %v1436_v49 = vpop.f32.mrb[5].mxu0  ;;  %v1542_v50 = vpop.f32.mrb[5].mxu1  ;;  %3129 = vmatpush1.bf16.msra.mxu1 %v3128_v43  ;;  %1998 = vrot.lane.b32.xlu1 %v4090_v36, %s3699_s30  ;;  %v4116_v53 = vadd.f32 %v1434_v47, %v680_v23  ;;  %v4118_v54 = vadd.f32 %v1540_v48, %v688_v24 }
 0x1fc   : > { %3121 = vmatpush1.bf16.msra.mxu0 %v3120_v44  ;;  %v1438_v51 = vpop.f32.mrb[6].mxu0  ;;  %v1544_v52 = vpop.f32.mrb[6].mxu1  ;;  %v4126_v59 = vadd.f32 %v1436_v49, %v684_v27  ;;  %v4128_v60 = vadd.f32 %v1542_v50, %v692_v28 }
 0x1fd   : > { %5455 = vst [vmem:[#allocation25_spill] sm:$0xff] %v4116_v53  ;;  %5456 = vst [vmem:[#allocation26_spill] sm:$0xff] %v4118_v54  ;;  %v4120_v55 = vadd.f32 %v1438_v51, %v680_v23  ;;  %v4122_v56 = vadd.f32 %v1544_v52, %v688_v24  ;;  %v1440_v57 = vpop.f32.mrb[7].mxu0  ;;  %v1546_v58 = vpop.f32.mrb[7].mxu1  ;;  %2124 = vrot.lane.b32.xlu0 %v4084_v29, %s3700_s14 }
 0x1fe   : > { %5459 = vst [vmem:[#allocation29_spill] sm:$0xff] %v4126_v59  ;;  %5460 = vst [vmem:[#allocation30_spill] sm:$0xff] %v4128_v60  ;;  %v4130_v61 = vadd.f32 %v1440_v57, %v684_v27  ;;  %v4132_v62 = vadd.f32 %v1546_v58, %v692_v28 }
 0x1ff   : > { %5457 = vst [vmem:[#allocation27_spill] sm:$0xff] %v4120_v55  ;;  %5458 = vst [vmem:[#allocation28_spill] sm:$0xff] %v4122_v56  ;;  %2126 = vrot.lane.b32.xlu1 %v4088_v35, %s3700_s14  ;;  %v3132_v63 = vpack.c.bf16 %v4122_v56, %v4118_v54  ;;  %v3124_v0 = vpack.c.bf16 %v4120_v55, %v4116_v53 }
 0x200   : > { %5461 = vst [vmem:[#allocation31_spill] sm:$0xff] %v4130_v61  ;;  %5462 = vst [vmem:[#allocation32_spill] sm:$0xff] %v4132_v62  ;;  %v3122_v1 = vpack.c.bf16 %v4130_v61, %v4126_v59  ;;  %v3130_v2 = vpack.c.bf16 %v4132_v62, %v4128_v60 }
 0x201   : > { %2140 = vrot.lane.b32.xlu0 %v4086_v34, %s3700_s14 }
 0x202   : > { %3123 = vmatprep.subr.bf16.mxu0 %v3122_v1  ;;  %3131 = vmatprep.subr.bf16.mxu1 %v3130_v2 }
 0x203   : > { %3133 = vmatpush1.bf16.msra.mxu1 %v3132_v63  ;;  %2142 = vrot.lane.b32.xlu1 %v4090_v36, %s3700_s14 }
 0x204   : > { %3125 = vmatpush1.bf16.msra.mxu0 %v3124_v0  ;;  %3143 = vmatprep.subr.bf16.mxu1 %v3126_v46 }
 0x205   : > { %3135 = vmatprep.subr.bf16.mxu0 %v3118_v45  ;;  %1988 = vrot.lane.b32.xlu0 %v4094_v39, %s3699_s30 }
 0x206   : > { %3079 = vmatmul.mubr.msk.f32.vlgmr.msra.gmra.mrb[8].mxu1 %vm1561_vm8, %v1557_v3 }
 0x207   : > { %3075 = vmatmul.mubr.msk.f32.vlgmr.msra.gmra.mrb[8].mxu0 %vm1561_vm8, %v1557_v3  ;;  %3145 = vmatpush1.bf16.msra.mxu1 %v3128_v43 }
 0x208   : > { %1990 = vrot.lane.b32.xlu1 %v4098_v41, %s3699_s30  ;;  %3137 = vmatpush1.bf16.msra.mxu0 %v3120_v44 }
 0x209   : > { %3139 = vmatprep.subr.bf16.mxu0 %v3122_v1  ;;  %3147 = vmatprep.subr.bf16.mxu1 %v3130_v2 }
 0x20a   : > { %1733 = vmatprep.mubr.f32.mxu1 %v3697_v16  ;;  %2004 = vrot.lane.b32.xlu0 %v4096_v40, %s3699_s30 }
 0x20b   : > { %3080 = vmatmul.mubr.msk.f32.gmra.mrb[10].mxu1 %vm1561_vm8, %v1558_v4  ;;  %1644 = vmatprep.mubr.f32.mxu0 %v3697_v16 }
 0x20c   : > { %3149 = vmatpush1.bf16.msra.mxu1 %v3132_v63  ;;  %2006 = vrot.lane.b32.xlu1 %v4100_v42, %s3699_s30 }
 0x20d   : > { %3141 = vmatpush1.bf16.msra.mxu0 %v3124_v0  ;;  %1739 = vmatprep.mubr.f32.mxu1 %v3697_v16 }
 0x20e   : > { %2132 = vrot.lane.b32.xlu0 %v4094_v39, %s3700_s14  ;;  %3076 = vmatmul.mubr.msk.f32.gmra.mrb[10].mxu0 %vm1561_vm8, %v1558_v4 }
 0x20f   : > { %1650 = vmatprep.mubr.f32.mxu0 %v3697_v16  ;;  %3081 = vmatmul.mubr.msk.f32.gmra.mrb[12].mxu1 %vm1561_vm8, %v1559_v5 }
 0x210   : > { %2134 = vrot.lane.b32.xlu1 %v4098_v41, %s3700_s14  ;;  %1745 = vmatprep.mubr.f32.mxu1 %v3697_v16 }
 0x212   : > { %2148 = vrot.lane.b32.xlu0 %v4096_v40, %s3700_s14  ;;  %3077 = vmatmul.mubr.msk.f32.gmra.mrb[12].mxu0 %vm1561_vm8, %v1559_v5 }
 0x213   : > { %1656 = vmatprep.mubr.f32.mxu0 %v3697_v16  ;;  %3082 = vmatmul.mubr.msk.f32.gmra.mrb[14].mxu1 %vm1561_vm8, %v1560_v6 }
 0x214   : > { %2150 = vrot.lane.b32.xlu1 %v4100_v42, %s3700_s14  ;;  %2390 = vmatprep.mubr.f32.mxu1 %v3697_v16 }
 0x216   : > { %1984 = vrot.lane.b32.xlu0 %v4116_v53, %s3699_s30  ;;  %3078 = vmatmul.mubr.msk.f32.gmra.mrb[14].mxu0 %vm1561_vm8, %v1560_v6 }
 0x217   : > { %2301 = vmatprep.mubr.f32.mxu0 %v3697_v16  ;;  %3087 = vmatmul.mubr.msk.f32.vlgmr.msra.gmra.mrb[16].mxu1 %vm1561_vm8, %v2221_v7 }
 0x218   : > { %1986 = vrot.lane.b32.xlu1 %v4120_v55, %s3699_s30  ;;  %2396 = vmatprep.mubr.f32.mxu1 %v3697_v16 }
 0x21a   : > { %2000 = vrot.lane.b32.xlu0 %v4118_v54, %s3699_s30  ;;  %3083 = vmatmul.mubr.msk.f32.vlgmr.msra.gmra.mrb[16].mxu0 %vm1561_vm8, %v2221_v7 }
 0x21b   : > { %2307 = vmatprep.mubr.f32.mxu0 %v3697_v16  ;;  %3088 = vmatmul.mubr.msk.f32.gmra.mrb[18].mxu1 %vm1561_vm8, %v2222_v8 }
 0x21c   : > { %2002 = vrot.lane.b32.xlu1 %v4122_v56, %s3699_s30  ;;  %2402 = vmatprep.mubr.f32.mxu1 %v3697_v16 }
 0x21e   : > { %2128 = vrot.lane.b32.xlu0 %v4116_v53, %s3700_s14  ;;  %3084 = vmatmul.mubr.msk.f32.gmra.mrb[18].mxu0 %vm1561_vm8, %v2222_v8 }
 0x21f   : > { %2313 = vmatprep.mubr.f32.mxu0 %v3697_v16  ;;  %3089 = vmatmul.mubr.msk.f32.gmra.mrb[20].mxu1 %vm1561_vm8, %v2223_v9 }
 0x220   : > { %2130 = vrot.lane.b32.xlu1 %v4120_v55, %s3700_s14  ;;  %2408 = vmatprep.mubr.f32.mxu1 %v3697_v16 }
 0x222   : > { %2144 = vrot.lane.b32.xlu0 %v4118_v54, %s3700_s14  ;;  %3085 = vmatmul.mubr.msk.f32.gmra.mrb[20].mxu0 %vm1561_vm8, %v2223_v9 }
 0x223   : > { %2319 = vmatprep.mubr.f32.mxu0 %v3697_v16  ;;  %3090 = vmatmul.mubr.msk.f32.gmra.mrb[22].mxu1 %vm1561_vm8, %v2224_v10 }
 0x224   : > { %2146 = vrot.lane.b32.xlu1 %v4122_v56, %s3700_s14 }
 0x226   : > { %1992 = vrot.lane.b32.xlu0 %v4126_v59, %s3699_s30  ;;  %3086 = vmatmul.mubr.msk.f32.gmra.mrb[22].mxu0 %vm1561_vm8, %v2224_v10 }
 0x228   : > { %1994 = vrot.lane.b32.xlu1 %v4130_v61, %s3699_s30 }
 0x22a   : > { %2008 = vrot.lane.b32.xlu0 %v4128_v60, %s3699_s30 }
 0x22c   : > { %2010 = vrot.lane.b32.xlu1 %v4132_v62, %s3699_s30 }
 0x22e   : > { %2136 = vrot.lane.b32.xlu0 %v4126_v59, %s3700_s14 }
 0x230   : > { %2138 = vrot.lane.b32.xlu1 %v4130_v61, %s3700_s14 }
 0x232   : > { %2152 = vrot.lane.b32.xlu0 %v4128_v60, %s3700_s14 }
 0x234   : > { %2154 = vrot.lane.b32.xlu1 %v4132_v62, %s3700_s14 }
 0x267   : > { %v1981_v16 = vpop.permute.xlu0 %1980 }
 0x269   : > { %v1983_v11 = vpop.permute.xlu1 %1982 }
 0x26b   : > { %v1997_v12 = vpop.permute.xlu0 %1996 }
 0x26d   : > { %v1999_v13 = vpop.permute.xlu1 %1998 }
 0x26f   : > { %v2125_v14 = vpop.permute.xlu0 %2124 }
 0x271   : > { %v2127_v23 = vpop.permute.xlu1 %2126 }
 0x273   : > { %v2141_v24 = vpop.permute.xlu0 %2140 }
 0x275   : > { %v2143_v25 = vpop.permute.xlu1 %2142 }
 0x277   : > { %v1989_v26 = vpop.permute.xlu0 %1988 }
 0x278   : > { %v4232_v27 = vsel %vm1786_vm9, %v1989_v26, %v1997_v12  ;;  %v4236_v28 = vsel %vm1786_vm9, %v1981_v16, %v1989_v26 }
 0x27a   : > { %v1991_v30 = vpop.permute.xlu1 %1990 }
 0x27b   : > { %v4240_v31 = vsel %vm1786_vm9, %v1991_v30, %v1999_v13  ;;  %v4244_v15 = vsel %vm1786_vm9, %v1983_v11, %v1991_v30 }
 0x27c   : > { %v2005_v32 = vpop.permute.xlu0 %2004 }
 0x27d   : > { %v4248_v33 = vsel %vm1786_vm9, %v1997_v12, %v2005_v32  ;;  %v4252_v37 = vsel %vm1786_vm9, %v2005_v32, %v1981_v16 }
 0x27e   : > { %v2007_v38 = vpop.permute.xlu1 %2006 }
 0x27f   : > { %v4257_v43 = vsel %vm1786_vm9, %v1999_v13, %v2007_v38  ;;  %v4261_v44 = vsel %vm1786_vm9, %v2007_v38, %v1983_v11 }
 0x280   : > { %v2133_v45 = vpop.permute.xlu0 %2132 }
 0x281   : > { %v4265_v46 = vsel %vm1915_vm10, %v2133_v45, %v2141_v24  ;;  %v4269_v47 = vsel %vm1915_vm10, %v2125_v14, %v2133_v45 }
 0x282   : > { %v2135_v48 = vpop.permute.xlu1 %2134 }
 0x283   : > { %v4273_v49 = vsel %vm1915_vm10, %v2135_v48, %v2143_v25  ;;  %v4277_v50 = vsel %vm1915_vm10, %v2127_v23, %v2135_v48 }
 0x284   : > { %5463 = vst [vmem:[#allocation33_spill] sm:$0xff] %v4273_v49  ;;  %5464 = vst [vmem:[#allocation34_spill] sm:$0xff] %v4277_v50  ;;  %v2149_v51 = vpop.permute.xlu0 %2148 }
 0x285   : > { %v4281_v52 = vsel %vm1915_vm10, %v2141_v24, %v2149_v51  ;;  %v4285_v57 = vsel %vm1915_vm10, %v2149_v51, %v2125_v14 }
 0x286   : > { %v2151_v58 = vpop.permute.xlu1 %2150 }
 0x287   : > { %v4289_v63 = vsel %vm1915_vm10, %v2143_v25, %v2151_v58  ;;  %v4293_v0 = vsel %vm1915_vm10, %v2151_v58, %v2127_v23 }
 0x288   : > { %5465 = vst [vmem:[#allocation35_spill] sm:$0xff] %v4289_v63  ;;  %5466 = vst [vmem:[#allocation36_spill] sm:$0xff] %v4293_v0  ;;  %v1985_v1 = vpop.permute.xlu0 %1984 }
 0x28a   : > { %v1987_v2 = vpop.permute.xlu1 %1986 }
 0x28c   : > { %v2001_v3 = vpop.permute.xlu0 %2000 }
 0x28e   : > { %v2003_v4 = vpop.permute.xlu1 %2002 }
 0x290   : > { %v4295_v5 = vpop.permute.xlu0 %2128 }
 0x291   : > { %5467 = vst [vmem:[#allocation37_spill] sm:$0xff] %v4295_v5 }
 0x292   : > { %v4297_v6 = vpop.permute.xlu1 %2130 }
 0x293   : > { %5468 = vst [vmem:[#allocation38_spill] sm:$0xff] %v4297_v6 }
 0x294   : > { %v4299_v7 = vpop.permute.xlu0 %2144 }
 0x295   : > { %5469 = vst [vmem:[#allocation39_spill] sm:$0xff] %v4299_v7 }
 0x296   : > { %v4301_v8 = vpop.permute.xlu1 %2146 }
 0x297   : > { %5470 = vst [vmem:[#allocation40_spill] sm:$0xff] %v4301_v8 }
 0x298   : > { %v1993_v9 = vpop.permute.xlu0 %1992 }
 0x299   : > { %v4305_v10 = vsel %vm1786_vm9, %v1993_v9, %v2001_v3  ;;  %v4309_v16 = vsel %vm1786_vm9, %v1985_v1, %v1993_v9 }
 0x29a   : > { %5471 = vst [vmem:[#allocation41_spill] sm:$0xff] %v4305_v10  ;;  %5472 = vst [vmem:[#allocation42_spill] sm:$0xff] %v4309_v16  ;;  %v1995_v11 = vpop.permute.xlu1 %1994 }
 0x29b   : > { %v4313_v12 = vsel %vm1786_vm9, %v1995_v11, %v2003_v4  ;;  %v4317_v13 = vsel %vm1786_vm9, %v1987_v2, %v1995_v11 }
 0x29c   : > { %5473 = vst [vmem:[#allocation43_spill] sm:$0xff] %v4313_v12  ;;  %5474 = vst [vmem:[#allocation44_spill] sm:$0xff] %v4317_v13  ;;  %v2009_v14 = vpop.permute.xlu0 %2008 }
 0x29d   : > { %v4321_v23 = vsel %vm1786_vm9, %v2001_v3, %v2009_v14  ;;  %v4325_v24 = vsel %vm1786_vm9, %v2009_v14, %v1985_v1 }
 0x29e   : > { %5475 = vst [vmem:[#allocation45_spill] sm:$0xff] %v4321_v23  ;;  %5476 = vst [vmem:[#allocation46_spill] sm:$0xff] %v4325_v24  ;;  %v2011_v25 = vpop.permute.xlu1 %2010 }
 0x29f   : > { %v4329_v26 = vsel %vm1786_vm9, %v2003_v4, %v2011_v25  ;;  %v4333_v30 = vsel %vm1786_vm9, %v2011_v25, %v1987_v2 }
 0x2a0   : > { %5477 = vst [vmem:[#allocation47_spill] sm:$0xff] %v4329_v26  ;;  %5478 = vst [vmem:[#allocation48_spill] sm:$0xff] %v4333_v30  ;;  %v2137_v32 = vpop.permute.xlu0 %2136 }
 0x2a1   : > { %v4338_v38 = vsel %vm1915_vm10, %v2137_v32, %v4299_v7  ;;  %v4343_v45 = vsel %vm1915_vm10, %v4295_v5, %v2137_v32 }
 0x2a2   : > { %5479 = vst [vmem:[#allocation49_spill] sm:$0xff] %v4338_v38  ;;  %5480 = vst [vmem:[#allocation50_spill] sm:$0xff] %v4343_v45  ;;  %v2139_v48 = vpop.permute.xlu1 %2138 }
 0x2a3   : > { %v4348_v51 = vsel %vm1915_vm10, %v2139_v48, %v4301_v8  ;;  %v4353_v58 = vsel %vm1915_vm10, %v4297_v6, %v2139_v48 }
 0x2a4   : > { %5481 = vst [vmem:[#allocation51_spill] sm:$0xff] %v4348_v51  ;;  %5482 = vst [vmem:[#allocation52_spill] sm:$0xff] %v4353_v58 }
 0x2d9   : > { %v4355_v1 = vpop.f32.mrb[8].mxu1 }
 0x2da   : > { %v4357_v2 = vpop.f32.mrb[8].mxu0  ;;  %v4359_v3 = vpop.f32.mrb[9].mxu1 }
 0x2db   : > { %1752 = vrot.lane.b32.xlu0 %v4357_v2, %s3699_s30  ;;  %v4363_v4 = vpop.f32.mrb[9].mxu0 }
 0x2de   : > { %v4365_v9 = vpop.f32.mrb[10].mxu1 }
 0x2df   : > { %1770 = vrot.lane.b32.xlu1 %v4365_v9, %s3699_s30  ;;  %1768 = vrot.lane.b32.xlu0 %v4355_v1, %s3699_s30  ;;  %v4371_v11 = vpop.f32.mrb[11].mxu1 }
 0x2e1   : > { %v4373_v14 = vpop.f32.mrb[10].mxu0 }
 0x2e2   : > { %v4375_v25 = vpop.f32.mrb[11].mxu0  ;;  %v4377_v32 = vpop.f32.mrb[12].mxu1 }
 0x2e3   : > { %5483 = vst [vmem:[#allocation53_spill] sm:$0xff] %v4377_v32  ;;  %1883 = vrot.lane.b32.xlu0 %v4357_v2, %s3700_s14  ;;  %1885 = vrot.lane.b32.xlu1 %v4373_v14, %s3700_s14  ;;  %v4383_v48 = vpop.f32.mrb[13].mxu1 }
 0x2e4   : > { %5484 = vst [vmem:[#allocation54_spill] sm:$0xff] %v4383_v48 }
 0x2e5   : > { %v4385_v6 = vpop.f32.mrb[12].mxu0 }
 0x2e6   : > { %5485 = vst [vmem:[#allocation55_spill] sm:$0xff] %v4385_v6  ;;  %v4387_v8 = vpop.f32.mrb[13].mxu0  ;;  %v4389_v5 = vpop.f32.mrb[14].mxu1 }
 0x2e7   : > { %5486 = vst [vmem:[#allocation56_spill] sm:$0xff] %v4387_v8  ;;  %5487 = vst [vmem:[#allocation57_spill] sm:$0xff] %v4389_v5  ;;  %1899 = vrot.lane.b32.xlu0 %v4355_v1, %s3700_s14  ;;  %1901 = vrot.lane.b32.xlu1 %v4365_v9, %s3700_s14  ;;  %v4395_v7 = vpop.f32.mrb[15].mxu1 }
 0x2e8   : > { %5488 = vst [vmem:[#allocation58_spill] sm:$0xff] %v4395_v7 }
 0x2e9   : > { %v4397_v51 = vpop.f32.mrb[14].mxu0 }
 0x2ea   : > { %5489 = vst [vmem:[#allocation59_spill] sm:$0xff] %v4397_v51  ;;  %v4399_v58 = vpop.f32.mrb[15].mxu0  ;;  %v4401_v38 = vpop.f32.mrb[16].mxu1 }
 0x2eb   : > { %5490 = vst [vmem:[#allocation60_spill] sm:$0xff] %v4399_v58  ;;  %5491 = vst [vmem:[#allocation61_spill] sm:$0xff] %v4401_v38  ;;  %1760 = vrot.lane.b32.xlu0 %v4363_v4, %s3699_s30  ;;  %1762 = vrot.lane.b32.xlu1 %v4375_v25, %s3699_s30  ;;  %v4407_v45 = vpop.f32.mrb[17].mxu1 }
 0x2ec   : > { %5492 = vst [vmem:[#allocation62_spill] sm:$0xff] %v4407_v45 }
 0x2ed   : > { %v4409_v26 = vpop.f32.mrb[16].mxu0 }
 0x2ee   : > { %5493 = vst [vmem:[#allocation63_spill] sm:$0xff] %v4409_v26  ;;  %v4411_v30 = vpop.f32.mrb[17].mxu0  ;;  %v4413_v23 = vpop.f32.mrb[18].mxu1 }
 0x2ef   : > { %5494 = vst [vmem:[#allocation64_spill] sm:$0xff] %v4411_v30  ;;  %5495 = vst [vmem:[#allocation65_spill] sm:$0xff] %v4413_v23  ;;  %1776 = vrot.lane.b32.xlu0 %v4359_v3, %s3699_s30  ;;  %1778 = vrot.lane.b32.xlu1 %v4371_v11, %s3699_s30  ;;  %v4419_v24 = vpop.f32.mrb[19].mxu1 }
 0x2f0   : > { %5496 = vst [vmem:[#allocation66_spill] sm:$0xff] %v4419_v24 }
 0x2f1   : > { %v4421_v12 = vpop.f32.mrb[18].mxu0 }
 0x2f2   : > { %5497 = vst [vmem:[#allocation67_spill] sm:$0xff] %v4421_v12  ;;  %v4423_v13 = vpop.f32.mrb[19].mxu0  ;;  %v4425_v10 = vpop.f32.mrb[20].mxu1 }
 0x2f3   : > { %5498 = vst [vmem:[#allocation68_spill] sm:$0xff] %v4423_v13  ;;  %5499 = vst [vmem:[#allocation69_spill] sm:$0xff] %v4425_v10  ;;  %1891 = vrot.lane.b32.xlu0 %v4363_v4, %s3700_s14  ;;  %1893 = vrot.lane.b32.xlu1 %v4375_v25, %s3700_s14  ;;  %v4431_v16 = vpop.f32.mrb[21].mxu1 }
 0x2f4   : > { %5500 = vst [vmem:[#allocation70_spill] sm:$0xff] %v4431_v16 }
 0x2f5   : > { %v4433_v62 = vpop.f32.mrb[20].mxu0 }
 0x2f6   : > { %5501 = vst [vmem:[#allocation71_spill] sm:$0xff] %v4433_v62  ;;  %v4435_v61 = vpop.f32.mrb[21].mxu0  ;;  %v4437_v56 = vpop.f32.mrb[22].mxu1 }
 0x2f7   : > { %5502 = vst [vmem:[#allocation72_spill] sm:$0xff] %v4435_v61  ;;  %5503 = vst [vmem:[#allocation73_spill] sm:$0xff] %v4437_v56  ;;  %1907 = vrot.lane.b32.xlu0 %v4359_v3, %s3700_s14  ;;  %1909 = vrot.lane.b32.xlu1 %v4371_v11, %s3700_s14  ;;  %v4443_v55 = vpop.f32.mrb[23].mxu1 }
 0x2f8   : > { %5504 = vst [vmem:[#allocation74_spill] sm:$0xff] %v4443_v55 }
 0x2f9   : > { %v4445_v60 = vpop.f32.mrb[22].mxu0 }
 0x2fa   : > { %5505 = vst [vmem:[#allocation75_spill] sm:$0xff] %v4445_v60  ;;  %v4447_v59 = vpop.f32.mrb[23].mxu0 }
 0x2fb   : > { %5506 = vst [vmem:[#allocation76_spill] sm:$0xff] %v4447_v59  ;;  %1754 = vrot.lane.b32.xlu0 %v4373_v14, %s3699_s30  ;;  %1756 = vrot.lane.b32.xlu1 %v4385_v6, %s3699_s30 }
 0x2ff   : > { %1772 = vrot.lane.b32.xlu0 %v4377_v32, %s3699_s30  ;;  %1758 = vrot.lane.b32.xlu1 %v4397_v51, %s3699_s30 }
 0x303   : > { %1887 = vrot.lane.b32.xlu0 %v4385_v6, %s3700_s14  ;;  %1774 = vrot.lane.b32.xlu1 %v4389_v5, %s3699_s30 }
 0x307   : > { %1903 = vrot.lane.b32.xlu0 %v4377_v32, %s3700_s14  ;;  %1889 = vrot.lane.b32.xlu1 %v4397_v51, %s3700_s14 }
 0x30b   : > { %1764 = vrot.lane.b32.xlu0 %v4387_v8, %s3699_s30  ;;  %1905 = vrot.lane.b32.xlu1 %v4389_v5, %s3700_s14 }
 0x30f   : > { %1780 = vrot.lane.b32.xlu0 %v4383_v48, %s3699_s30  ;;  %1766 = vrot.lane.b32.xlu1 %v4399_v58, %s3699_s30 }
 0x313   : > { %1895 = vrot.lane.b32.xlu0 %v4387_v8, %s3700_s14  ;;  %1782 = vrot.lane.b32.xlu1 %v4395_v7, %s3699_s30 }
 0x317   : > { %1911 = vrot.lane.b32.xlu0 %v4383_v48, %s3700_s14  ;;  %1897 = vrot.lane.b32.xlu1 %v4399_v58, %s3700_s14 }
 0x31b   : > { %1913 = vrot.lane.b32.xlu1 %v4395_v7, %s3700_s14  ;;  %2415 = vrot.lane.b32.xlu0 %v4409_v26, %s3699_s30 }
 0x31f   : > { %2431 = vrot.lane.b32.xlu0 %v4401_v38, %s3699_s30  ;;  %2417 = vrot.lane.b32.xlu1 %v4421_v12, %s3699_s30 }
 0x323   : > { %2559 = vrot.lane.b32.xlu0 %v4409_v26, %s3700_s14  ;;  %2433 = vrot.lane.b32.xlu1 %v4413_v23, %s3699_s30 }
 0x327   : > { %2575 = vrot.lane.b32.xlu0 %v4401_v38, %s3700_s14  ;;  %2561 = vrot.lane.b32.xlu1 %v4421_v12, %s3700_s14  ;;  %v4548_v12 = vld [vmem:[#allocation9 + $0x8] sm:$0xff] }
 0x328   : > { %5511 = vst [vmem:[#allocation81_spill] sm:$0xff] %v4548_v12 }
 0x32b   : > { %2423 = vrot.lane.b32.xlu0 %v4411_v30, %s3699_s30  ;;  %2577 = vrot.lane.b32.xlu1 %v4413_v23, %s3700_s14  ;;  %v4546_v23 = vld [vmem:[#allocation9 + $0x10] sm:$0xff] }
 0x32c   : > { %5510 = vst [vmem:[#allocation80_spill] sm:$0xff] %v4546_v23  ;;  %v4621_v48 = vrot.slane %v4546_v23, %v4078_v21 }
 0x32f   : > { %2439 = vrot.lane.b32.xlu0 %v4407_v45, %s3699_s30  ;;  %2425 = vrot.lane.b32.xlu1 %v4423_v13, %s3699_s30 }
 0x333   : > { %2567 = vrot.lane.b32.xlu0 %v4411_v30, %s3700_s14  ;;  %2441 = vrot.lane.b32.xlu1 %v4419_v24, %s3699_s30  ;;  %v4550_v30 = vld [vmem:[#allocation9 + $0x18] sm:$0xff] }
 0x334   : > { %5512 = vst [vmem:[#allocation82_spill] sm:$0xff] %v4550_v30  ;;  %v4629_v32 = vrot.slane %v4550_v30, %v4078_v21 }
 0x337   : > { %2583 = vrot.lane.b32.xlu0 %v4407_v45, %s3700_s14  ;;  %2569 = vrot.lane.b32.xlu1 %v4423_v13, %s3700_s14  ;;  %v4529_v13 = vpop.permute.xlu0 %2152 }
 0x338   : > { %5507 = vst [vmem:[#allocation77_spill] sm:$0xff] %v4529_v13 }
 0x33b   : > { %2585 = vrot.lane.b32.xlu1 %v4419_v24, %s3700_s14  ;;  %2419 = vrot.lane.b32.xlu0 %v4433_v62, %s3699_s30  ;;  %v4535_v24 = vpop.permute.xlu1 %2154 }
 0x33c   : > { %5508 = vst [vmem:[#allocation78_spill] sm:$0xff] %v4535_v24 }
 0x33f   : > { %2435 = vrot.lane.b32.xlu0 %v4425_v10, %s3699_s30  ;;  %2421 = vrot.lane.b32.xlu1 %v4445_v60, %s3699_s30 }
 0x343   : > { %2563 = vrot.lane.b32.xlu0 %v4433_v62, %s3700_s14  ;;  %2437 = vrot.lane.b32.xlu1 %v4437_v56, %s3699_s30 }
 0x347   : > { %2579 = vrot.lane.b32.xlu0 %v4425_v10, %s3700_s14  ;;  %2565 = vrot.lane.b32.xlu1 %v4445_v60, %s3700_s14  ;;  %v4543_v10 = vld [vmem:[#allocation9] sm:$0xff]  ;;  %v2078_v60 = vsub.s32 4, %v4063_v17 }
 0x348   : > { %5509 = vst [vmem:[#allocation79_spill] sm:$0xff] %v4543_v10  ;;  %v4625_v6 = vrot.slane %v4543_v10, %v4078_v21  ;;  %v4655_v53 = vrot.slane %v4543_v10, %v4075_v22 }
 0x349   : > { %v4559_v26 = vrot.slane %v4543_v10, %v2078_v60  ;;  %v4562_v38 = vrot.slane %v4546_v23, %v2078_v60  ;;  %v4565_v24 = vrot.slane %v4548_v12, %v2078_v60  ;;  %v4568_v13 = vrot.slane %v4550_v30, %v2078_v60 }
 0x34a   : > { %v1851_v0 = vmul.f32 %v4655_v53, %v4357_v2 }
 0x34b   : > { %2427 = vrot.lane.b32.xlu0 %v4435_v61, %s3699_s30  ;;  %2581 = vrot.lane.b32.xlu1 %v4437_v56, %s3700_s14  ;;  %5513 = vst [vmem:[#allocation83_spill] sm:$0xff] %v4559_v26  ;;  %5514 = vst [vmem:[#allocation84_spill] sm:$0xff] %v4562_v38  ;;  %v4581_v58 = vmul.f32 %v4084_v29, %v4559_v26  ;;  %v4585_v60 = vmul.f32 %v4086_v34, %v4562_v38 }
 0x34c   : > { %5515 = vst [vmem:[#allocation85_spill] sm:$0xff] %v4565_v24  ;;  %5516 = vst [vmem:[#allocation86_spill] sm:$0xff] %v4568_v13  ;;  %v4589_v5 = vmul.f32 %v4094_v39, %v4565_v24  ;;  %v4601_v29 = vrot.slane %v4548_v12, %v4078_v21  ;;  %v4605_v34 = vrot.slane %v4546_v23, %v4075_v22 }
 0x34d   : > { %v4537_v62 = vpop.permute.xlu0 %1752  ;;  %v4609_v39 = vrot.slane %v4548_v12, %v4075_v22 }
 0x34e   : > { %5519 = vst [vmem:[#allocation89_spill] sm:$0xff] %v4605_v34  ;;  %v4663_v49 = vmul.f32 %v4601_v29, %v4236_v28  ;;  %v1853_v50 = vmul.f32 %v4605_v34, %v4355_v1  ;;  %v1857_v41 = vmul.f32 %v4605_v34, %v4365_v9  ;;  %v4684_v9 = vrot.slane %v4543_v10, %v4066_v18 }
 0x34f   : > { %2443 = vrot.lane.b32.xlu0 %v4431_v16, %s3699_s30  ;;  %2429 = vrot.lane.b32.xlu1 %v4447_v59, %s3699_s30 }
 0x351   : > { %v4552_v56 = vpop.permute.xlu1 %1770  ;;  %v1769_v45 = vpop.permute.xlu0 %1768 }
 0x353   : > { %2571 = vrot.lane.b32.xlu0 %v4435_v61, %s3700_s14  ;;  %2445 = vrot.lane.b32.xlu1 %v4443_v55, %s3699_s30  ;;  %v2174_v61 = vsub.s32 5, %v4063_v17  ;;  %v4593_v17 = vmul.f32 %v4096_v40, %v4568_v13 }
 0x355   : > { %v4570_v7 = vpop.permute.xlu0 %1883  ;;  %v4572_v51 = vpop.permute.xlu1 %1885  ;;  %5517 = vst [vmem:[#allocation87_spill] sm:$0xff] %v4593_v17  ;;  %v4632_v8 = vrot.slane %v4543_v10, %v2174_v61  ;;  %v4635_v54 = vrot.slane %v4548_v12, %v2174_v61  ;;  %v4648_v21 = vrot.slane %v4546_v23, %v2174_v61 }
 0x357   : > { %2587 = vrot.lane.b32.xlu0 %v4431_v16, %s3700_s14  ;;  %2573 = vrot.lane.b32.xlu1 %v4447_v59, %s3700_s14  ;;  %v4597_v16 = vmul.f32 %v4090_v36, %v4562_v38  ;;  %v4617_v36 = vmul.f32 %v4100_v42, %v4568_v13  ;;  %v4641_v42 = vrot.slane %v4548_v12, %v4066_v18 }
 0x358   : > { %v4645_v13 = vrot.slane %v4546_v23, %v4066_v18  ;;  %v4651_v38 = vrot.slane %v4550_v30, %v2174_v61  ;;  %v1852_v61 = vmul.f32 %v4609_v39, %v4363_v4 }
 0x359   : > { %5518 = vst [vmem:[#allocation88_spill] sm:$0xff] %v4597_v16  ;;  %v4611_v59 = vpop.permute.xlu0 %1899  ;;  %v4613_v40 = vpop.permute.xlu1 %1901  ;;  %5520 = vst [vmem:[#allocation90_spill] sm:$0xff] %v4617_v36  ;;  %v4691_v36 = vrot.slane %v4550_v30, %v4066_v18  ;;  %v4699_v16 = vmul.f32 %v4601_v29, %v4244_v15 }
 0x35a   : > { %5521 = vst [vmem:[#allocation91_spill] sm:$0xff] %v4645_v13 }
 0x35b   : > { %2589 = vrot.lane.b32.xlu1 %v4443_v55, %s3700_s14  ;;  %v4659_v55 = vrot.slane %v4550_v30, %v4075_v22 }
 0x35d   : > { %v1761_v24 = vpop.permute.xlu0 %1760  ;;  %v4671_v35 = vpop.permute.xlu1 %1762 }
 0x35e   : > { %v1791_v22 = vsel %vm1786_vm9, %v1761_v24, %v1769_v45  ;;  %v1795_v28 = vsel %vm1786_vm9, %v4537_v62, %v1761_v24  ;;  %v1792_v1 = vsel %vm1786_vm9, %v4671_v35, %v4552_v56  ;;  %v4695_v24 = vmul.f32 %v4621_v48, %v4232_v27 }
 0x35f   : > { %v1820_v4 = vmul.f32 %v4641_v42, %v1795_v28  ;;  %v1821_v34 = vmul.f32 %v4645_v13, %v1791_v22  ;;  %v1825_v26 = vmul.f32 %v4645_v13, %v1792_v1  ;;  %v1854_v22 = vmul.f32 %v4659_v55, %v4359_v3 }
 0x360   : > { %v1858_v28 = vmul.f32 %v4659_v55, %v4371_v11  ;;  %v4717_v3 = vrot.slane %v4543_v10, %v4072_v20  ;;  %v4734_v11 = vmul.f32 %v4625_v6, %v4261_v44 }
 0x361   : > { %v1868_v1 = vadd.f32 %v1852_v61, %v1820_v4  ;;  %v1869_v18 = vadd.f32 %v1853_v50, %v1821_v34  ;;  %v1873_v13 = vadd.f32 %v1857_v41, %v1825_v26  ;;  %v1777_v63 = vpop.permute.xlu0 %1776  ;;  %v1779_v17 = vpop.permute.xlu1 %1778  ;;  %v2051_v34 = vmul.f32 %v4629_v32, %v4257_v43 }
 0x362   : > { %v1787_v27 = vsel %vm1786_vm9, %v1769_v45, %v1777_v63  ;;  %v1799_v15 = vsel %vm1786_vm9, %v1777_v63, %v4537_v62  ;;  %v1788_v2 = vsel %vm1786_vm9, %v4552_v56, %v1779_v17  ;;  %v4724_v45 = vrot.slane %v4548_v12, %v4072_v20 }
 0x363   : > { %v1819_v50 = vmul.f32 %v4684_v9, %v1799_v15  ;;  %v1822_v41 = vmul.f32 %v4691_v36, %v1787_v27  ;;  %v1826_v26 = vmul.f32 %v4691_v36, %v1788_v2  ;;  %v2050_v62 = vmul.f32 %v4621_v48, %v4240_v31 }
 0x364   : > { %v2044_v56 = vmul.f32 %v4625_v6, %v4252_v37  ;;  %v2047_v63 = vmul.f32 %v4629_v32, %v4248_v33  ;;  %v2188_v31 = vmul.f32 %v4632_v8, %v4269_v47  ;;  %v2189_v37 = vmul.f32 %v4635_v54, %v4265_v46 }
 0x365   : > { %v1867_v61 = vadd.f32 %v1851_v0, %v1819_v50  ;;  %v1870_v4 = vadd.f32 %v1854_v22, %v1822_v41  ;;  %v1874_v27 = vadd.f32 %v1858_v28, %v1826_v26  ;;  %v1892_v15 = vpop.permute.xlu0 %1891  ;;  %v1894_v2 = vpop.permute.xlu1 %1893  ;;  %v4752_v22 = vrot.slane %v4546_v23, %v4072_v20 }
 0x366   : > { %v1920_v33 = vsel %vm1915_vm10, %v1892_v15, %v4611_v59  ;;  %v1924_v44 = vsel %vm1915_vm10, %v4570_v7, %v1892_v15  ;;  %v4756_v47 = vrot.slane %v4550_v30, %v4072_v20  ;;  %v2190_v46 = vmul.f32 %v4648_v21, %v4281_v52 }
 0x367   : > { %v1948_v43 = vmul.f32 %v4717_v3, %v1924_v44  ;;  %v1949_v0 = vmul.f32 %v4724_v45, %v1920_v33  ;;  %v2191_v28 = vmul.f32 %v4651_v38, %v4285_v57  ;;  %v1855_v50 = vmul.f32 %v4655_v53, %v4373_v14 }
 0x368   : > { %v1856_v41 = vmul.f32 %v4609_v39, %v4375_v25  ;;  %v1921_v33 = vsel %vm1915_vm10, %v1894_v2, %v4613_v40  ;;  %v1925_v44 = vsel %vm1915_vm10, %v4572_v51, %v1894_v2 }
 0x369   : > { %v1964_v26 = vadd.f32 %v1948_v43, %v1867_v61  ;;  %v1965_v15 = vadd.f32 %v1949_v0, %v1868_v1  ;;  %v1908_v52 = vpop.permute.xlu0 %1907  ;;  %v1910_v20 = vpop.permute.xlu1 %1909  ;;  %v1953_v12 = vmul.f32 %v4724_v45, %v1921_v33 }
 0x36a   : > { %v1916_v57 = vsel %vm1915_vm10, %v4611_v59, %v1908_v52  ;;  %v1928_v14 = vsel %vm1915_vm10, %v1908_v52, %v4570_v7  ;;  %v1917_v25 = vsel %vm1915_vm10, %v4613_v40, %v1910_v20  ;;  %v1929_v1 = vsel %vm1915_vm10, %v1910_v20, %v4572_v51 }
 0x36b   : > { %v2060_v61 = vadd.f32 %v2044_v56, %v1964_v26  ;;  %v2061_v2 = vadd.f32 %v4663_v49, %v1965_v15  ;;  %v1950_v43 = vmul.f32 %v4752_v22, %v1916_v57  ;;  %v1951_v0 = vmul.f32 %v4756_v47, %v1928_v14 }
 0x36c   : > { %v1952_v59 = vmul.f32 %v4717_v3, %v1925_v44  ;;  %v1954_v7 = vmul.f32 %v4752_v22, %v1917_v25  ;;  %v1955_v52 = vmul.f32 %v4756_v47, %v1929_v1  ;;  %v5525_v1 = vld [vmem:[#allocation36_spill] sm:$0xff] }
 0x36d   : > { %v1966_v40 = vadd.f32 %v1950_v43, %v1869_v18  ;;  %v1967_v30 = vadd.f32 %v1951_v0, %v1870_v4  ;;  %v1755_v10 = vpop.permute.xlu0 %1754  ;;  %v4791_v23 = vpop.permute.xlu1 %1756  ;;  %v2109_v20 = vadd.f32 %v4589_v5, %v2061_v2  ;;  %v2108_v49 = vadd.f32 %v4581_v58, %v2060_v61  ;;  %v5527_v61 = vld [vmem:[#allocation90_spill] sm:$0xff] }
 0x36e   : > { %v1970_v51 = vadd.f32 %v1954_v7, %v1873_v13  ;;  %v1971_v56 = vadd.f32 %v1955_v52, %v1874_v27  ;;  %v1796_v26 = vsel %vm1786_vm9, %v1755_v10, %v4671_v35  ;;  %v1800_v15 = vsel %vm1786_vm9, %v1779_v17, %v1755_v10  ;;  %v5523_v10 = vld [vmem:[#allocation87_spill] sm:$0xff] }
 0x36f   : > { %v2062_v33 = vadd.f32 %v4695_v24, %v1966_v40  ;;  %v2063_v18 = vadd.f32 %v2047_v63, %v1967_v30  ;;  %v1823_v4 = vmul.f32 %v4684_v9, %v1800_v15  ;;  %v1824_v44 = vmul.f32 %v4641_v42, %v1796_v26  ;;  %v5524_v30 = vld [vmem:[#allocation35_spill] sm:$0xff]  ;;  %v5536_v15 = vld [vmem:[#allocation33_spill] sm:$0xff] }
 0x370   : > { %v2066_v57 = vadd.f32 %v2050_v62, %v1970_v51  ;;  %v2067_v5 = vadd.f32 %v2051_v34, %v1971_v56  ;;  %v4803_v14 = vadd.f32 %v2189_v37, %v2109_v20  ;;  %v4805_v13 = vadd.f32 %v2188_v31, %v2108_v49  ;;  %v5526_v34 = vld [vmem:[#allocation88_spill] sm:$0xff]  ;;  %v5531_v7 = vld [vmem:[#allocation83_spill] sm:$0xff]  ;;  %v5533_v20 = vld [vmem:[#allocation85_spill] sm:$0xff] }
 0x371   : > { %v1871_v58 = vadd.f32 %v1855_v50, %v1823_v4  ;;  %v1872_v27 = vadd.f32 %v1856_v41, %v1824_v44  ;;  %v1773_v25 = vpop.permute.xlu0 %1772  ;;  %v4807_v35 = vpop.permute.xlu1 %1758  ;;  %v2110_v17 = vadd.f32 %v4585_v60, %v2062_v33  ;;  %v2111_v24 = vadd.f32 %v5523_v10, %v2063_v18  ;;  %v5532_v52 = vld [vmem:[#allocation23_spill] sm:$0xff]  ;;  %v5534_v49 = vld [vmem:[#allocation24_spill] sm:$0xff] }
 0x372   : > { %5522 = vst [vmem:[#allocation92_spill] sm:$0xff] %v4805_v13  ;;  %v2194_v63 = vmul.f32 %v4648_v21, %v5524_v30  ;;  %v2195_v62 = vmul.f32 %v4651_v38, %v5525_v1  ;;  %v2114_v37 = vadd.f32 %v5526_v34, %v2066_v57  ;;  %v2115_v31 = vadd.f32 %v5527_v61, %v2067_v5  ;;  %v5544_v1 = vld [vmem:[#allocation30_spill] sm:$0xff]  ;;  %v5545_v34 = vld [vmem:[#allocation27_spill] sm:$0xff]  ;;  %v5546_v61 = vld [vmem:[#allocation28_spill] sm:$0xff] }
 0x373   : > { %v1968_v2 = vadd.f32 %v1952_v59, %v1871_v58  ;;  %v1969_v50 = vadd.f32 %v1953_v12, %v1872_v27  ;;  %v4817_v41 = vadd.f32 %v2190_v46, %v2110_v17  ;;  %v4819_v43 = vadd.f32 %v2191_v28, %v2111_v24  ;;  %v5535_v46 = vld [vmem:[#allocation34_spill] sm:$0xff]  ;;  %v5540_v27 = vld [vmem:[#allocation84_spill] sm:$0xff]  ;;  %v5542_v24 = vld [vmem:[#allocation29_spill] sm:$0xff] }
 0x374   : > { %v4821_v0 = vadd.f32 %v2194_v63, %v2114_v37  ;;  %v4823_v60 = vadd.f32 %v2195_v62, %v2115_v31  ;;  %v2096_v40 = vmul.f32 %v5532_v52, %v5531_v7  ;;  %v2097_v51 = vmul.f32 %v5534_v49, %v5533_v20  ;;  %v5541_v17 = vld [vmem:[#allocation26_spill] sm:$0xff]  ;;  %v5548_v52 = vld [vmem:[#allocation32_spill] sm:$0xff] }
 0x375   : > { %5528 = vst [vmem:[#allocation87_spill] sm:$0xff] %v4819_v43  ;;  %v2064_v56 = vadd.f32 %v4734_v11, %v1968_v2  ;;  %v2065_v26 = vadd.f32 %v4699_v16, %v1969_v50  ;;  %v4831_v59 = vpop.permute.xlu0 %1887  ;;  %v1775_v12 = vpop.permute.xlu1 %1774  ;;  %v2192_v28 = vmul.f32 %v4632_v8, %v5535_v46  ;;  %v2193_v33 = vmul.f32 %v4635_v54, %v5536_v15  ;;  %v5539_v16 = vld [vmem:[#allocation25_spill] sm:$0xff]  ;;  %v5543_v63 = vld [vmem:[#allocation86_spill] sm:$0xff]  ;;  %v5547_v2 = vld [vmem:[#allocation31_spill] sm:$0xff] }
 0x376   : > { %5529 = vst [vmem:[#allocation35_spill] sm:$0xff] %v4821_v0  ;;  %5530 = vst [vmem:[#allocation36_spill] sm:$0xff] %v4823_v60  ;;  %v4847_v58 = vmul.f32 %v5539_v16, %v5531_v7  ;;  %v4851_v10 = vmul.f32 %v5541_v17, %v5540_v27  ;;  %v4855_v30 = vmul.f32 %v5542_v24, %v5533_v20  ;;  %v5549_v49 = vld [vmem:[#allocation42_spill] sm:$0xff]  ;;  %v5554_v16 = vld [vmem:[#allocation45_spill] sm:$0xff] }
 0x377   : > { %v2113_v18 = vadd.f32 %v2097_v51, %v2065_v26  ;;  %v2112_v4 = vadd.f32 %v2096_v40, %v2064_v56  ;;  %v4859_v62 = vmul.f32 %v5544_v1, %v5543_v63  ;;  %v4863_v37 = vmul.f32 %v5545_v34, %v5531_v7  ;;  %v5550_v56 = vld [vmem:[#allocation41_spill] sm:$0xff]  ;;  %v5551_v26 = vld [vmem:[#allocation44_spill] sm:$0xff] }
 0x378   : > { %v4867_v31 = vmul.f32 %v5546_v61, %v5540_v27  ;;  %v4871_v50 = vmul.f32 %v5547_v2, %v5533_v20  ;;  %v4875_v40 = vmul.f32 %v5548_v52, %v5543_v63  ;;  %v4879_v51 = vmul.f32 %v4601_v29, %v5549_v49  ;;  %v5555_v24 = vld [vmem:[#allocation56_spill] sm:$0xff]  ;;  %v5556_v63 = vld [vmem:[#allocation53_spill] sm:$0xff]  ;;  %v5558_v2 = vld [vmem:[#allocation91_spill] sm:$0xff] }
 0x379   : > { %v4837_v44 = vpop.permute.xlu0 %1903  ;;  %v4839_v57 = vpop.permute.xlu1 %1889  ;;  %v4841_v5 = vadd.f32 %v2193_v33, %v2113_v18  ;;  %v4843_v11 = vadd.f32 %v2192_v28, %v2112_v4  ;;  %v4883_v7 = vmul.f32 %v4621_v48, %v5550_v56  ;;  %v4887_v46 = vmul.f32 %v4601_v29, %v5551_v26  ;;  %v5552_v28 = vld [vmem:[#allocation43_spill] sm:$0xff]  ;;  %v5553_v18 = vld [vmem:[#allocation46_spill] sm:$0xff]  ;;  %v5557_v1 = vld [vmem:[#allocation89_spill] sm:$0xff] }
 0x37a   : > { %v4891_v20 = vmul.f32 %v4621_v48, %v5552_v28  ;;  %v2052_v4 = vmul.f32 %v4625_v6, %v5553_v18  ;;  %v4899_v27 = vmul.f32 %v4629_v32, %v5554_v16  ;;  %v1860_v48 = vmul.f32 %v4609_v39, %v5555_v24  ;;  %v5559_v49 = vld [vmem:[#allocation48_spill] sm:$0xff]  ;;  %v5560_v26 = vld [vmem:[#allocation47_spill] sm:$0xff]  ;;  %v5562_v16 = vld [vmem:[#allocation54_spill] sm:$0xff] }
 0x37b   : > { %5537 = vst [vmem:[#allocation88_spill] sm:$0xff] %v4841_v5  ;;  %5538 = vst [vmem:[#allocation90_spill] sm:$0xff] %v4843_v11  ;;  %v1861_v34 = vmul.f32 %v5557_v1, %v5556_v63  ;;  %v4914_v56 = vmul.f32 %v4625_v6, %v5559_v49  ;;  %v4918_v28 = vmul.f32 %v4629_v32, %v5560_v26  ;;  %v5561_v18 = vld [vmem:[#allocation55_spill] sm:$0xff]  ;;  %v5563_v60 = vld [vmem:[#allocation57_spill] sm:$0xff] }
 0x37c   : > { %v1862_v24 = vmul.f32 %v4659_v55, %v5562_v16  ;;  %v1865_v63 = vmul.f32 %v5557_v1, %v5563_v60  ;;  %v5567_v16 = vld [vmem:[#allocation59_spill] sm:$0xff] }
 0x37d   : > { %v1765_v15 = vpop.permute.xlu0 %1764  ;;  %v4893_v33 = vpop.permute.xlu1 %1905 }
 0x37e   : > { %v1793_v17 = vsel %vm1786_vm9, %v1765_v15, %v1773_v25  ;;  %v1797_v29 = vsel %vm1786_vm9, %v4791_v23, %v1765_v15  ;;  %v1859_v15 = vmul.f32 %v4655_v53, %v5561_v18 }
 0x37f   : > { %v1828_v61 = vmul.f32 %v4641_v42, %v1797_v29  ;;  %v1829_v52 = vmul.f32 %v5558_v2, %v1793_v17  ;;  %v5564_v29 = vld [vmem:[#allocation60_spill] sm:$0xff] }
 0x380   : > { %v1864_v17 = vmul.f32 %v4609_v39, %v5564_v29  ;;  %v1863_v29 = vmul.f32 %v4655_v53, %v5567_v16 }
 0x381   : > { %v1876_v11 = vadd.f32 %v1860_v48, %v1828_v61  ;;  %v1877_v0 = vadd.f32 %v1861_v34, %v1829_v52  ;;  %v1781_v6 = vpop.permute.xlu0 %1780  ;;  %v1767_v49 = vpop.permute.xlu1 %1766  ;;  %v5566_v52 = vld [vmem:[#allocation49_spill] sm:$0xff] }
 0x382   : > { %v1789_v32 = vsel %vm1786_vm9, %v1773_v25, %v1781_v6  ;;  %v1801_v26 = vsel %vm1786_vm9, %v1781_v6, %v4791_v23  ;;  %v1794_v18 = vsel %vm1786_vm9, %v1767_v49, %v1775_v12  ;;  %v1798_v60 = vsel %vm1786_vm9, %v4807_v35, %v1767_v49  ;;  %v5565_v25 = vld [vmem:[#allocation50_spill] sm:$0xff] }
 0x383   : > { %v1827_v39 = vmul.f32 %v4684_v9, %v1801_v26  ;;  %v1830_v48 = vmul.f32 %v4691_v36, %v1789_v32  ;;  %v1832_v1 = vmul.f32 %v4641_v42, %v1798_v60  ;;  %v1833_v34 = vmul.f32 %v5558_v2, %v1794_v18  ;;  %v5568_v6 = vld [vmem:[#allocation58_spill] sm:$0xff]  ;;  %v5569_v60 = vld [vmem:[#allocation52_spill] sm:$0xff] }
 0x384   : > { %v2196_v61 = vmul.f32 %v4632_v8, %v5565_v25  ;;  %v2197_v23 = vmul.f32 %v4635_v54, %v5566_v52  ;;  %v1866_v49 = vmul.f32 %v4659_v55, %v5568_v6 }
 0x385   : > { %v1875_v5 = vadd.f32 %v1859_v15, %v1827_v39  ;;  %v1878_v26 = vadd.f32 %v1862_v24, %v1830_v48  ;;  %v1880_v43 = vadd.f32 %v1864_v17, %v1832_v1  ;;  %v1881_v32 = vadd.f32 %v1865_v63, %v1833_v34  ;;  %v1896_v13 = vpop.permute.xlu0 %1895  ;;  %v1783_v42 = vpop.permute.xlu1 %1782  ;;  %v5570_v48 = vld [vmem:[#allocation51_spill] sm:$0xff]  ;;  %v5571_v1 = vld [vmem:[#allocation77_spill] sm:$0xff] }
 0x386   : > { %v1922_v2 = vsel %vm1915_vm10, %v1896_v13, %v4837_v44  ;;  %v1926_v18 = vsel %vm1915_vm10, %v4831_v59, %v1896_v13  ;;  %v1790_v53 = vsel %vm1786_vm9, %v1775_v12, %v1783_v42  ;;  %v1802_v55 = vsel %vm1786_vm9, %v1783_v42, %v4807_v35  ;;  %v5572_v12 = vld [vmem:[#allocation39_spill] sm:$0xff]  ;;  %v5573_v35 = vld [vmem:[#allocation37_spill] sm:$0xff] }
 0x387   : > { %v1956_v15 = vmul.f32 %v4717_v3, %v1926_v18  ;;  %v1957_v24 = vmul.f32 %v4724_v45, %v1922_v2  ;;  %v1831_v63 = vmul.f32 %v4684_v9, %v1802_v55  ;;  %v1834_v17 = vmul.f32 %v4691_v36, %v1790_v53 }
 0x388   : > { %v2200_v39 = vmul.f32 %v4632_v8, %v5569_v60  ;;  %v2201_v13 = vmul.f32 %v4635_v54, %v5570_v48  ;;  %v2158_v34 = vsel %vm1915_vm10, %v5572_v12, %v5571_v1  ;;  %v2170_v25 = vsel %vm1915_vm10, %v5571_v1, %v5573_v35 }
 0x389   : > { %v1972_v52 = vadd.f32 %v1956_v15, %v1875_v5  ;;  %v1973_v9 = vadd.f32 %v1957_v24, %v1876_v11  ;;  %v1879_v16 = vadd.f32 %v1863_v29, %v1831_v63  ;;  %v1882_v36 = vadd.f32 %v1866_v49, %v1834_v17  ;;  %v1912_v6 = vpop.permute.xlu0 %1911  ;;  %v1898_v42 = vpop.permute.xlu1 %1897 }
 0x38a   : > { %v1918_v54 = vsel %vm1915_vm10, %v4837_v44, %v1912_v6  ;;  %v1930_v8 = vsel %vm1915_vm10, %v1912_v6, %v4831_v59  ;;  %v1923_v2 = vsel %vm1915_vm10, %v1898_v42, %v4893_v33  ;;  %v1927_v5 = vsel %vm1915_vm10, %v4839_v57, %v1898_v42 }
 0x38b   : > { %v2068_v11 = vadd.f32 %v2052_v4, %v1972_v52  ;;  %v2069_v29 = vadd.f32 %v4879_v51, %v1973_v9  ;;  %v1958_v49 = vmul.f32 %v4752_v22, %v1918_v54  ;;  %v1959_v18 = vmul.f32 %v4756_v47, %v1930_v8  ;;  %v5575_v52 = vld [vmem:[#allocation40_spill] sm:$0xff] }
 0x38c   : > { %v2198_v44 = vmul.f32 %v4648_v21, %v2158_v34  ;;  %v2199_v53 = vmul.f32 %v4651_v38, %v2170_v25  ;;  %v1960_v59 = vmul.f32 %v4717_v3, %v1927_v5  ;;  %v1961_v55 = vmul.f32 %v4724_v45, %v1923_v2 }
 0x38d   : > { %v1974_v15 = vadd.f32 %v1958_v49, %v1877_v0  ;;  %v1975_v24 = vadd.f32 %v1959_v18, %v1878_v26  ;;  %v1914_v63 = vpop.permute.xlu1 %1913  ;;  %v4996_v17 = vpop.permute.xlu0 %2415  ;;  %v2117_v4 = vadd.f32 %v4855_v30, %v2069_v29  ;;  %v2116_v51 = vadd.f32 %v4847_v58, %v2068_v11  ;;  %v5579_v29 = vld [vmem:[#allocation79_spill] sm:$0xff]  ;;  %v5581_v18 = vld [vmem:[#allocation81_spill] sm:$0xff] }
 0x38e   : > { %v1976_v60 = vadd.f32 %v1960_v59, %v1879_v16  ;;  %v1977_v48 = vadd.f32 %v1961_v55, %v1880_v43  ;;  %v1919_v1 = vsel %vm1915_vm10, %v4893_v33, %v1914_v63  ;;  %v1931_v3 = vsel %vm1915_vm10, %v1914_v63, %v4839_v57  ;;  %v5582_v55 = vld [vmem:[#allocation61_spill] sm:$0xff] }
 0x38f   : > { %v2070_v45 = vadd.f32 %v4883_v7, %v1974_v15  ;;  %v2071_v0 = vadd.f32 %v4899_v27, %v1975_v24  ;;  %v1962_v26 = vmul.f32 %v4752_v22, %v1919_v1  ;;  %v1963_v30 = vmul.f32 %v4756_v47, %v1931_v3  ;;  %v5574_v22 = vld [vmem:[#allocation78_spill] sm:$0xff] }
 0x390   : > { %v2072_v58 = vadd.f32 %v4914_v56, %v1976_v60  ;;  %v2073_v43 = vadd.f32 %v4887_v46, %v1977_v48  ;;  %v5012_v12 = vadd.f32 %v2197_v23, %v2117_v4  ;;  %v5014_v34 = vadd.f32 %v2196_v61, %v2116_v51  ;;  %v5576_v56 = vld [vmem:[#allocation38_spill] sm:$0xff]  ;;  %v5583_v4 = vld [vmem:[#allocation63_spill] sm:$0xff] }
 0x391   : > { %v1978_v33 = vadd.f32 %v1962_v26, %v1881_v32  ;;  %v1979_v35 = vadd.f32 %v1963_v30, %v1882_v36  ;;  %v2432_v25 = vpop.permute.xlu0 %2431  ;;  %v5016_v57 = vpop.permute.xlu1 %2417  ;;  %v2118_v7 = vadd.f32 %v4851_v10, %v2070_v45  ;;  %v2119_v27 = vadd.f32 %v4859_v62, %v2071_v0  ;;  %v5584_v60 = vld [vmem:[#allocation62_spill] sm:$0xff] }
 0x392   : > { %v2159_v47 = vsel %vm1915_vm10, %v5575_v52, %v5574_v22  ;;  %v2171_v46 = vsel %vm1915_vm10, %v5574_v22, %v5576_v56  ;;  %v2121_v61 = vadd.f32 %v4871_v50, %v2073_v43  ;;  %v2120_v23 = vadd.f32 %v4863_v37, %v2072_v58  ;;  %v2655_v45 = vld [vmem:[%s5353_s5] sm:$0xf]  ;;  %v5585_v43 = vld [vmem:[#allocation64_spill] sm:$0xff] }
 0x393   : > { %v2074_v32 = vadd.f32 %v4891_v20, %v1978_v33  ;;  %v2075_v10 = vadd.f32 %v4918_v28, %v1979_v35  ;;  %v5032_v9 = vadd.f32 %v2198_v44, %v2118_v7  ;;  %v5034_v62 = vadd.f32 %v2199_v53, %v2119_v27  ;;  %v5577_v28 = vld [vmem:[#allocation18_spill] sm:$0xff]  ;;  %v5586_v35 = vld [vmem:[#allocation67_spill] sm:$0xff]  ;;  %v5587_v27 = vld [vmem:[#allocation65_spill] sm:$0xff] }
 0x394   : > { %v5036_v16 = vadd.f32 %v2201_v13, %v2121_v61  ;;  %v5038_v36 = vadd.f32 %v2200_v39, %v2120_v23  ;;  %v2202_v6 = vmul.f32 %v4648_v21, %v2159_v47  ;;  %v2203_v42 = vmul.f32 %v4651_v38, %v2171_v46  ;;  %v5578_v39 = vld [vmem:[#allocation80_spill] sm:$0xff]  ;;  %v5588_v52 = vld [vmem:[#allocation66_spill] sm:$0xff] }
 0x395   : > { %v5042_v54 = vpop.permute.xlu0 %2559  ;;  %v2434_v50 = vpop.permute.xlu1 %2433  ;;  %v2122_v37 = vadd.f32 %v4867_v31, %v2074_v32  ;;  %v2123_v20 = vadd.f32 %v4875_v40, %v2075_v10  ;;  %v2513_v8 = vsub.s32 7, %v5577_v28  ;;  %v2465_v2 = vsub.s32 6, %v5577_v28  ;;  %v5580_v31 = vld [vmem:[#allocation82_spill] sm:$0xff]  ;;  %v5589_v56 = vld [vmem:[#allocation68_spill] sm:$0xff] }
 0x397   : > { %v5048_v5 = vadd.f32 %v2202_v6, %v2122_v37  ;;  %v5050_v13 = vadd.f32 %v2203_v42, %v2123_v20  ;;  %v5053_v11 = vrot.slane %v5578_v39, %v2513_v8  ;;  %v5060_v49 = vrot.slane %v5579_v29, %v2513_v8  ;;  %v5590_v6 = vld [vmem:[#allocation19_spill] sm:$0xff] }
 0x398   : > { %v5063_v40 = vrot.slane %v5580_v31, %v2513_v8  ;;  %v5066_v44 = vrot.slane %v5581_v18, %v2465_v2  ;;  %v5069_v53 = vrot.slane %v5578_v39, %v2465_v2  ;;  %v5072_v59 = vrot.slane %v5581_v18, %v2513_v8 }
 0x399   : > { %v5055_v21 = vpop.permute.xlu0 %2575  ;;  %v5057_v38 = vpop.permute.xlu1 %2561  ;;  %v2529_v15 = vmul.f32 %v5053_v11, %v5582_v55  ;;  %v2527_v51 = vmul.f32 %v5060_v49, %v5583_v4  ;;  %v5093_v30 = vrot.slane %v5579_v29, %v2465_v2  ;;  %v5096_v58 = vrot.slane %v5580_v31, %v2465_v2  ;;  %v5129_v29 = vld [vmem:[#allocation9 + $0x28] ss:$0 sm:$0xff] }
 0x39a   : > { %v2530_v48 = vmul.f32 %v5063_v40, %v5584_v60  ;;  %v2528_v33 = vmul.f32 %v5072_v59, %v5585_v43  ;;  %v2531_v7 = vmul.f32 %v5060_v49, %v5586_v35  ;;  %v2533_v22 = vmul.f32 %v5053_v11, %v5587_v27  ;;  %v5593_v60 = vld [vmem:[#allocation92_spill] sm:$0xff]  ;;  %v5596_v35 = vld [vmem:[#allocation35_spill] sm:$0xff] }
 0x39b   : > { %v2534_v47 = vmul.f32 %v5063_v40, %v5588_v52  ;;  %v2532_v46 = vmul.f32 %v5072_v59, %v5589_v56  ;;  %v5111_v42 = vrot.slane %v2655_v45, %v5590_v6 }
 0x39d   : > { %v2424_v24 = vpop.permute.xlu0 %2423  ;;  %v5076_v63 = vpop.permute.xlu1 %2577 }
 0x39e   : > { %v2451_v1 = vsel %vm1786_vm9, %v2424_v24, %v2432_v25  ;;  %v2455_v3 = vsel %vm1786_vm9, %v4996_v17, %v2424_v24  ;;  %v5592_v24 = vld [vmem:[#allocation20_spill] sm:$0xff] }
 0x39f   : > { %v2480_v0 = vmul.f32 %v5066_v44, %v2455_v3  ;;  %v2481_v26 = vmul.f32 %v5069_v53, %v2451_v1  ;;  %v5135_v4 = vrot.slane %v2655_v45, %v5592_v24  ;;  %v5594_v3 = vld [vmem:[#allocation87_spill] sm:$0xff] }
 0x3a1   : > { %v2496_v61 = vadd.f32 %v2480_v0, %v4803_v14  ;;  %v2497_v23 = vadd.f32 %v2481_v26, %v4817_v41  ;;  %v2440_v32 = vpop.permute.xlu0 %2439  ;;  %v2426_v10 = vpop.permute.xlu1 %2425  ;;  %v5595_v26 = vld [vmem:[#allocation88_spill] sm:$0xff] }
 0x3a2   : > { %v2447_v37 = vsel %vm1786_vm9, %v2432_v25, %v2440_v32  ;;  %v2459_v20 = vsel %vm1786_vm9, %v2440_v32, %v4996_v17  ;;  %v2452_v28 = vsel %vm1786_vm9, %v2426_v10, %v2434_v50  ;;  %v2456_v14 = vsel %vm1786_vm9, %v5016_v57, %v2426_v10  ;;  %v5127_v25 = vld [vmem:[#allocation9 + $0x20] ss:$0 sm:$0xff]  ;;  %v5591_v17 = vld [vmem:[#allocation21_spill] sm:$0xff] }
 0x3a3   : > { %v2479_v41 = vmul.f32 %v5093_v30, %v2459_v20  ;;  %v2482_v8 = vmul.f32 %v5096_v58, %v2447_v37  ;;  %v2484_v2 = vmul.f32 %v5066_v44, %v2456_v14  ;;  %v2485_v39 = vmul.f32 %v5069_v53, %v2452_v28  ;;  %v5156_v28 = vld [vmem:[#allocation9 + $0x30] ss:$0 sm:$0xff]  ;;  %v5158_v14 = vld [vmem:[#allocation9 + $0x38] ss:$0 sm:$0xff] }
 0x3a4   : > { %v5132_v31 = vrot.slane %v2655_v45, %v5591_v17  ;;  %v2544_v18 = vadd.f32 %v2528_v33, %v2496_v61  ;;  %v2545_v55 = vadd.f32 %v2529_v15, %v2497_v23  ;;  %v5597_v17 = vld [vmem:[#allocation90_spill] sm:$0xff] }
 0x3a5   : > { %v2495_v1 = vadd.f32 %v2479_v41, %v5593_v60  ;;  %v2498_v0 = vadd.f32 %v2482_v8, %v5594_v3  ;;  %v2500_v43 = vadd.f32 %v2484_v2, %v5595_v26  ;;  %v2501_v27 = vadd.f32 %v2485_v39, %v5596_v35  ;;  %v2568_v52 = vpop.permute.xlu0 %2567  ;;  %v2442_v56 = vpop.permute.xlu1 %2441  ;;  %v5599_v3 = vld [vmem:[#allocation36_spill] sm:$0xff] }
 0x3a6   : > { %v2595_v32 = vsel %vm1915_vm10, %v2568_v52, %v5055_v21  ;;  %v2599_v15 = vsel %vm1915_vm10, %v5042_v54, %v2568_v52  ;;  %v2448_v33 = vsel %vm1786_vm9, %v2434_v50, %v2442_v56  ;;  %v2460_v61 = vsel %vm1786_vm9, %v2442_v56, %v5016_v57 }
 0x3a7   : > { %v2543_v23 = vadd.f32 %v2527_v51, %v2495_v1  ;;  %v2623_v10 = vmul.f32 %v5127_v25, %v2599_v15  ;;  %v2624_v6 = vmul.f32 %v5129_v29, %v2595_v32  ;;  %v2483_v37 = vmul.f32 %v5093_v30, %v2460_v61  ;;  %v5598_v51 = vld [vmem:[#allocation22_spill] sm:$0xff] }
 0x3a8   : > { %v2486_v20 = vmul.f32 %v5096_v58, %v2448_v33  ;;  %v2546_v41 = vadd.f32 %v2530_v48, %v2498_v0  ;;  %v2548_v8 = vadd.f32 %v2532_v46, %v2500_v43  ;;  %v2549_v50 = vadd.f32 %v2533_v22, %v2501_v27 }
 0x3a9   : > { %v2639_v2 = vadd.f32 %v2623_v10, %v2543_v23  ;;  %v2640_v39 = vadd.f32 %v2624_v6, %v2544_v18  ;;  %v2499_v57 = vadd.f32 %v2483_v37, %v5597_v17  ;;  %v5162_v24 = vrot.slane %v2655_v45, %v5598_v51  ;;  %v2584_v60 = vpop.permute.xlu0 %2583  ;;  %v2570_v1 = vpop.permute.xlu1 %2569 }
 0x3aa   : > { %v2502_v26 = vadd.f32 %v2486_v20, %v5599_v3  ;;  %v2591_v35 = vsel %vm1915_vm10, %v5055_v21, %v2584_v60  ;;  %v2603_v48 = vsel %vm1915_vm10, %v2584_v60, %v5042_v54  ;;  %v2596_v22 = vsel %vm1915_vm10, %v2570_v1, %v5076_v63 }
 0x3ab   : > { %v2677_v46 = vadd.f32 %v5111_v42, %v2639_v2  ;;  %v2678_v45 = vadd.f32 %v5132_v31, %v2640_v39  ;;  %v2625_v18 = vmul.f32 %v5156_v28, %v2591_v35  ;;  %v2626_v0 = vmul.f32 %v5158_v14, %v2603_v48 }
 0x3ac   : > { %v2547_v43 = vadd.f32 %v2531_v7, %v2499_v57  ;;  %v2600_v21 = vsel %vm1915_vm10, %v5057_v38, %v2570_v1  ;;  %v2628_v54 = vmul.f32 %v5129_v29, %v2596_v22  ;;  %v2550_v27 = vadd.f32 %v2534_v47, %v2502_v26 }
 0x3ad   : > { %v3109_v52 = vpack.c.bf16 %v2678_v45, %v2677_v46  ;;  %v2641_v56 = vadd.f32 %v2625_v18, %v2545_v55  ;;  %v2642_v32 = vadd.f32 %v2626_v0, %v2546_v41  ;;  %v2627_v15 = vmul.f32 %v5127_v25, %v2600_v21  ;;  %v2586_v33 = vpop.permute.xlu1 %2585  ;;  %v2420_v61 = vpop.permute.xlu0 %2419 }
 0x3ae   : > { %v2644_v23 = vadd.f32 %v2628_v54, %v2548_v8  ;;  %v2592_v7 = vsel %vm1915_vm10, %v5076_v63, %v2586_v33  ;;  %v2604_v10 = vsel %vm1915_vm10, %v2586_v33, %v5057_v38  ;;  %v5601_v54 = vld [vmem:[#allocation69_spill] sm:$0xff] }
 0x3af   : > { %2741 = vst [vmem:[%s3961_s9] sm:$0xff] %v3109_v52  ;;  %v2679_v47 = vadd.f32 %v5135_v4, %v2641_v56  ;;  %v2680_v55 = vadd.f32 %v5162_v24, %v2642_v32  ;;  %v2643_v6 = vadd.f32 %v2627_v15, %v2547_v43  ;;  %v2629_v37 = vmul.f32 %v5156_v28, %v2592_v7  ;;  %v5600_v43 = vld [vmem:[#allocation71_spill] sm:$0xff]  ;;  %v5602_v52 = vld [vmem:[#allocation70_spill] sm:$0xff]  ;;  %v5603_v32 = vld [vmem:[#allocation72_spill] sm:$0xff] }
 0x3b0   : > { %v2682_v20 = vadd.f32 %v5132_v31, %v2644_v23  ;;  %v2630_v41 = vmul.f32 %v5158_v14, %v2604_v10  ;;  %v2535_v21 = vmul.f32 %v5060_v49, %v5600_v43  ;;  %v2538_v56 = vmul.f32 %v5063_v40, %v5602_v52  ;;  %v5604_v33 = vld [vmem:[#allocation73_spill] sm:$0xff] }
 0x3b1   : > { %v3110_v8 = vpack.c.bf16 %v2680_v55, %v2679_v47  ;;  %v2681_v63 = vadd.f32 %v5111_v42, %v2643_v6  ;;  %v2645_v2 = vadd.f32 %v2629_v37, %v2549_v50  ;;  %v2436_v39 = vpop.permute.xlu0 %2435  ;;  %v2422_v38 = vpop.permute.xlu1 %2421  ;;  %v2536_v15 = vmul.f32 %v5072_v59, %v5603_v32 }
 0x3b2   : > { %v2646_v17 = vadd.f32 %v2630_v41, %v2550_v27  ;;  %v2537_v27 = vmul.f32 %v5053_v11, %v5601_v54  ;;  %v2541_v23 = vmul.f32 %v5053_v11, %v5604_v33 }
 0x3b3   : > { %2742 = vst [vmem:[%s3961_s9 + $0x8] sm:$0xff] %v3110_v8  ;;  %v3111_v57 = vpack.c.bf16 %v2682_v20, %v2681_v63  ;;  %v2683_v51 = vadd.f32 %v5135_v4, %v2645_v2  ;;  %v5605_v63 = vld [vmem:[#allocation76_spill] sm:$0xff] }
 0x3b4   : > { %v2684_v60 = vadd.f32 %v5162_v24, %v2646_v17  ;;  %v2540_v2 = vmul.f32 %v5072_v59, %v5605_v63 }
 0x3b5   : > { %2743 = vst [vmem:[%s3961_s9 + $0x10] sm:$0xff] %v3111_v57  ;;  %v2564_v1 = vpop.permute.xlu0 %2563  ;;  %v2438_v3 = vpop.permute.xlu1 %2437 }
 0x3b6   : > { %v3112_v26 = vpack.c.bf16 %v2684_v60, %v2683_v51 }
 0x3b8   : > { %2744 = vst [vmem:[%s3961_s9 + $0x18] sm:$0xff] %v3112_v26 }
 0x3b9   : > { %v2580_v35 = vpop.permute.xlu0 %2579  ;;  %v5201_v48 = vpop.permute.xlu1 %2565 }
 0x3bd   : > { %v2428_v22 = vpop.permute.xlu0 %2427  ;;  %v5203_v46 = vpop.permute.xlu1 %2581 }
 0x3be   : > { %v2453_v50 = vsel %vm1786_vm9, %v2428_v22, %v2436_v39  ;;  %v2457_v45 = vsel %vm1786_vm9, %v2420_v61, %v2428_v22 }
 0x3bf   : > { %v2488_v18 = vmul.f32 %v5066_v44, %v2457_v45  ;;  %v2489_v0 = vmul.f32 %v5069_v53, %v2453_v50 }
 0x3c1   : > { %v2504_v7 = vadd.f32 %v2488_v18, %v5012_v12  ;;  %v2505_v10 = vadd.f32 %v2489_v0, %v5032_v9  ;;  %v2444_v47 = vpop.permute.xlu0 %2443  ;;  %v2430_v55 = vpop.permute.xlu1 %2429 }
 0x3c2   : > { %v2449_v6 = vsel %vm1786_vm9, %v2436_v39, %v2444_v47  ;;  %v2461_v37 = vsel %vm1786_vm9, %v2444_v47, %v2420_v61  ;;  %v2454_v20 = vsel %vm1786_vm9, %v2430_v55, %v2438_v3  ;;  %v2458_v41 = vsel %vm1786_vm9, %v2422_v38, %v2430_v55  ;;  %v5606_v39 = vld [vmem:[#allocation74_spill] sm:$0xff] }
 0x3c3   : > { %v2487_v11 = vmul.f32 %v5093_v30, %v2461_v37  ;;  %v2490_v12 = vmul.f32 %v5096_v58, %v2449_v6  ;;  %v2492_v9 = vmul.f32 %v5066_v44, %v2458_v41  ;;  %v2493_v8 = vmul.f32 %v5069_v53, %v2454_v20 }
 0x3c4   : > { %v2542_v61 = vmul.f32 %v5063_v40, %v5606_v39  ;;  %v2552_v17 = vadd.f32 %v2536_v15, %v2504_v7  ;;  %v2553_v57 = vadd.f32 %v2537_v27, %v2505_v10  ;;  %v5607_v27 = vld [vmem:[#allocation75_spill] sm:$0xff] }
 0x3c5   : > { %v2503_v51 = vadd.f32 %v2487_v11, %v5014_v34  ;;  %v2506_v60 = vadd.f32 %v2490_v12, %v5034_v62  ;;  %v2508_v26 = vadd.f32 %v2492_v9, %v5036_v16  ;;  %v2509_v22 = vadd.f32 %v2493_v8, %v5048_v5  ;;  %v2572_v50 = vpop.permute.xlu0 %2571  ;;  %v2446_v44 = vpop.permute.xlu1 %2445 }
 0x3c6   : > { %v2597_v53 = vsel %vm1915_vm10, %v2572_v50, %v2580_v35  ;;  %v2601_v59 = vsel %vm1915_vm10, %v2564_v1, %v2572_v50  ;;  %v2450_v40 = vsel %vm1786_vm9, %v2438_v3, %v2446_v44  ;;  %v2462_v34 = vsel %vm1786_vm9, %v2446_v44, %v2422_v38 }
 0x3c7   : > { %v2551_v45 = vadd.f32 %v2535_v21, %v2503_v51  ;;  %v2631_v62 = vmul.f32 %v5127_v25, %v2601_v59  ;;  %v2632_v16 = vmul.f32 %v5129_v29, %v2597_v53  ;;  %v2491_v5 = vmul.f32 %v5093_v30, %v2462_v34 }
 0x3c8   : > { %v2494_v18 = vmul.f32 %v5096_v58, %v2450_v40  ;;  %v2554_v0 = vadd.f32 %v2538_v56, %v2506_v60  ;;  %v2556_v43 = vadd.f32 %v2540_v2, %v2508_v26  ;;  %v2557_v54 = vadd.f32 %v2541_v23, %v2509_v22 }
 0x3c9   : > { %v2539_v52 = vmul.f32 %v5060_v49, %v5607_v27  ;;  %v2647_v32 = vadd.f32 %v2631_v62, %v2551_v45  ;;  %v2648_v3 = vadd.f32 %v2632_v16, %v2552_v17  ;;  %v2507_v15 = vadd.f32 %v2491_v5, %v5038_v36  ;;  %v2588_v38 = vpop.permute.xlu0 %2587  ;;  %v2574_v21 = vpop.permute.xlu1 %2573 }
 0x3ca   : > { %v2510_v33 = vadd.f32 %v2494_v18, %v5050_v13  ;;  %v2593_v7 = vsel %vm1915_vm10, %v2580_v35, %v2588_v38  ;;  %v2605_v30 = vsel %vm1915_vm10, %v2588_v38, %v2564_v1  ;;  %v2598_v58 = vsel %vm1915_vm10, %v2574_v21, %v5203_v46 }
 0x3cb   : > { %v2685_v49 = vadd.f32 %v5111_v42, %v2647_v32  ;;  %v2686_v56 = vadd.f32 %v5132_v31, %v2648_v3  ;;  %v2633_v36 = vmul.f32 %v5156_v28, %v2593_v7  ;;  %v2634_v23 = vmul.f32 %v5158_v14, %v2605_v30 }
 0x3cc   : > { %v2555_v13 = vadd.f32 %v2539_v52, %v2507_v15  ;;  %v2602_v35 = vsel %vm1915_vm10, %v5201_v48, %v2574_v21  ;;  %v2636_v1 = vmul.f32 %v5129_v29, %v2598_v58  ;;  %v2558_v10 = vadd.f32 %v2542_v61, %v2510_v33 }
 0x3cd   : > { %v3113_v47 = vpack.c.bf16 %v2686_v56, %v2685_v49  ;;  %v2649_v55 = vadd.f32 %v2633_v36, %v2553_v57  ;;  %v2650_v6 = vadd.f32 %v2634_v23, %v2554_v0  ;;  %v2635_v37 = vmul.f32 %v5127_v25, %v2602_v35  ;;  %v2590_v20 = vpop.permute.xlu1 %2589 }
 0x3ce   : > { %v2652_v41 = vadd.f32 %v2636_v1, %v2556_v43  ;;  %v2594_v11 = vsel %vm1915_vm10, %v5203_v46, %v2590_v20  ;;  %v2606_v12 = vsel %vm1915_vm10, %v2590_v20, %v5201_v48 }
 0x3cf   : > { %2745 = vst [vmem:[%s3961_s9 + $0x20] sm:$0xff] %v3113_v47  ;;  %v2687_v29 = vadd.f32 %v5135_v4, %v2649_v55  ;;  %v2688_v9 = vadd.f32 %v5162_v24, %v2650_v6  ;;  %v2651_v25 = vadd.f32 %v2635_v37, %v2555_v13  ;;  %v2637_v8 = vmul.f32 %v5156_v28, %v2594_v11 }
 0x3d0   : > { %v2690_v63 = vadd.f32 %v5132_v31, %v2652_v41  ;;  %v2638_v2 = vmul.f32 %v5158_v14, %v2606_v12 }
 0x3d1   : > { %v3114_v46 = vpack.c.bf16 %v2688_v9, %v2687_v29  ;;  %v2689_v39 = vadd.f32 %v5111_v42, %v2651_v25  ;;  %v2653_v19 = vadd.f32 %v2637_v8, %v2557_v54 }
 0x3d2   : > { %v2654_v48 = vadd.f32 %v2638_v2, %v2558_v10 }
 0x3d3   : > { %2746 = vst [vmem:[%s3961_s9 + $0x28] sm:$0xff] %v3114_v46  ;;  %v3115_v61 = vpack.c.bf16 %v2690_v63, %v2689_v39  ;;  %v2691_v17 = vadd.f32 %v5135_v4, %v2653_v19 }
 0x3d4   : > { %v2692_v28 = vadd.f32 %v5162_v24, %v2654_v48 }
 0x3d5   : > { %2747 = vst [vmem:[%s3961_s9 + $0x30] sm:$0xff] %v3115_v61 }
 0x3d6   : > { %v3116_v42 = vpack.c.bf16 %v2692_v28, %v2691_v17 }
 0x3d8   : > { %2748 = vst [vmem:[%s3961_s9 + $0x38] sm:$0xff] %v3116_v42 }
 0x3d9   : > { %3607 = shalt.err (!%p3604_p9)
}
 0x3da   : > { %s3608_s9 = scalar_lea.hbm %s5297_s20, 1024  ;;  %s3612_s30 = scalar_lea.hbm %s5354_s6, 4096 }
 0x3db   : > { %p3609_p12 = scmp.ne.s32.totalorder %s5297_s20, %s3608_s9  ;;  %p3613_p7 = scmp.lt.u32.totalorder %s5297_s20, %s5354_s6 }
 0x3dc   : > { %p3614_p10 = scmp.lt.u32.totalorder %s3612_s30, %s3608_s9  ;;  %p3616_p4 = scmp.lt.u32.totalorder %s3608_s9, %s5297_s20 }
 0x3dd   : > { %p3610_p1 = pnand %p3609_p12, %p3882_p6 }
 0x3de   : > { %p3615_p2 = por %p3614_p10, %p3613_p7 }
 0x3df   : > { %p3611_p3 = pneg %p3610_p1 }
 0x3e0   : > { %p3617_p8 = por %p3616_p4, %p3615_p2 }
 0x3e2   : > { %p3618_p11 = pnand %p3617_p8, %p3611_p3 }
 0x3e4   : > { %3621 = shalt.err (!%p3618_p11)
}
 0x3e5   : > { %s3702_s1 = smov 256   ;;  %s3703_s12 = smov 16  }
 0x3e6   : > { %3196 = dma.vmem_to_hbm [thread:$0]  (%p3882_p6), %s5299_s28, 1024, %s5297_s20, %s2750_s24, %s3702_s1, %s3702_s1, %s3703_s12  }
 0x3e7 PF: > { %s5608_s10 = sld [smem:[#allocation16_spill]]  ;;  %s5609_s11 = sld [smem:[#allocation17_spill]] }
 0x3e8   : > { %p3223_p13 = scmp.ge.s32.totalorder %s3684_s26, 2 }
 0x3ed   : > { %s2781_s15 = sand.u32 1, %s5608_s10   ;;  %p5610_p0 = scmp.ne.s32.totalorder %s5609_s11, 0 }
 0x3ee   : > { %s2782_s17 = scalar_lea.sflag [#allocation5], %s2781_s15 }
 0x3ef   : > { %p3213_p5 = pnand %p3223_p13, %p5610_p0 }
 0x3f1   : > { %3659 = dma.done.wait (!%p3213_p5), %s2782_s17, 1024  }
 0x3f2   : > { %3661 = vsyncadd (!%p3213_p5), %s2782_s17, 4294966272  ;;  %s24_s26 = sadd.s32 1, %s3684_s26   ;;  %s5611_s8 = smov %s5618_s21 }
 0x3f3   : > { %p21_p9 = scmp.ge.s32.totalorder %s24_s26, 6   ;;  %s5612_s21 = smov %s3668_s22 }
 0x3f4   : > { %s5613_s22 = smov %s3672_s23  ;;  %s5614_s23 = smov %s3894_s27 }
 0x3f5   : > { %s5615_s24 = smov %s3680_s25  ;;  %s5616_s25 = smov %s5611_s8 }
 0x3f6   :  { %23 = sbr.rel (!%p21_p9) target bundleno = 10 (0xa), region = 106 }
 0x3fd   :  { %2787 = vsyncpa [#allocation4], 1 }
 0x3fe   :  { %2789 = vsyncpa [#allocation4 + $0x1], 1 }
 0x3ff   :  { %2790 = vsyncpa [#allocation7], 1 }
 0x400   :  { %2791 = vsyncpa [#allocation10], 1 }
 0x401   :  { %2792 = vsyncpa [#allocation5], 1 }
 0x402   :  { %2794 = vsyncpa [#allocation5 + $0x1], 1 }

</bundles_post_ra>
